<compile_context>
chip_gen: v6e
topology: v6e:2x2x1
jax: 0.10.0
libtpu: 0.0.40
codegen_flags: <defaults>
</compile_context>

<pallas_src>
import jax
import jax.numpy as jnp
from jax.experimental import pallas as pl
from jax.experimental.pallas import tpu as pltpu

# ---- network hyper-params (from the PyTorch module) -------------------------
C_IN = 4          # in_features
L = 16            # sequence length (in_size)
N = 2             # batch

C1, K1, P1 = 50, 21, 10
C2, K2, P2 = 30, 11, 5
C3, K3, P3 = 20, 7, 3
C4, K4, P4 = 1, 1, 0


def _im2col(h, K, pad):
    """h: (Cin, N*L) batch-folded activation -> (K*Cin, N*L) im2col matrix.

    Row k*Cin + c, column b*L + t  ==  zero-padded h_b[c, t + k], so that
    (Cout, K*Cin) @ im2col == 'same'-padded cross-correlation (PyTorch Conv1d).
    Batch elements never bleed into each other: each is padded independently.
    """
    cin = h.shape[0]
    if K == 1 and pad == 0:
        return h
    cols = []
    for b in range(N):                                   # static unroll, N=2
        hb = h[:, b * L:(b + 1) * L]                     # (cin, L)
        z = jnp.zeros((cin, pad), jnp.float32)
        hp = jnp.concatenate([z, hb, z], axis=1)         # (cin, L + K - 1)
        taps = [hp[:, k:k + L] for k in range(K)]        # K shifted views
        cols.append(jnp.concatenate(taps, axis=0))       # (K*cin, L)
    return jnp.concatenate(cols, axis=1)                 # (K*cin, N*L)


def net_kernel(x_ref,
               w1_ref, b1_ref, w2_ref, b2_ref, w3_ref, b3_ref, w4_ref, b4_ref,
               o_ref):
    """Whole network, whole batch, one grid step. x_ref: (C_IN, N*L)."""
    x = x_ref[...].astype(jnp.float32)

    def layer(h, w_ref, b_ref, K, pad, act):
        xcol = _im2col(h, K, pad)                        # (K*Cin, N*L)
        y = jnp.dot(w_ref[...], xcol,                    # single MXU matmul
                    preferred_element_type=jnp.float32)
        y = y + b_ref[...]                               # (Cout,1) bcast over lanes
        return act(y)

    relu = lambda v: jnp.maximum(v, 0.0)
    h = layer(x, w1_ref, b1_ref, K1, P1, relu)           # (50, N*L)
    h = layer(h, w2_ref, b2_ref, K2, P2, relu)           # (30, N*L)
    h = layer(h, w3_ref, b3_ref, K3, P3, relu)           # (20, N*L)
    out = layer(h, w4_ref, b4_ref, K4, P4, jax.nn.sigmoid)  # (1, N*L)
    o_ref[...] = out.astype(o_ref.dtype)


def _full_spec(arr):
    nd = arr.ndim
    return pl.BlockSpec(arr.shape, lambda i, _nd=nd: (0,) * _nd)


@jax.jit
def net_forward(x, params):
    n, c_in, seq = x.shape
    (w1, b1, w2, b2, w3, b3, w4, b4) = params

    def w2d(w):  # PyTorch (Cout, Cin, K) -> (Cout, K*Cin), tap-major columns
        cout, cin, k = w.shape
        return jnp.transpose(w, (0, 2, 1)).reshape(cout, k * cin)

    def col(b):  # (Cout,) -> (Cout, 1) for lane-broadcast bias add
        return b.reshape(-1, 1)

    # fold batch into the lane axis: (N, Cin, L) -> (Cin, N*L)
    x2 = jnp.transpose(x, (1, 0, 2)).reshape(c_in, n * seq)
    ins = (x2, w2d(w1), col(b1), w2d(w2), col(b2),
           w2d(w3), col(b3), w2d(w4), col(b4))

    grid_spec = pltpu.PrefetchScalarGridSpec(
        num_scalar_prefetch=0,
        grid=(1,),                                   # single step: no per-step overhead
        in_specs=[_full_spec(a) for a in ins],       # everything resident in VMEM
        out_specs=pl.BlockSpec((1, n * seq), lambda i: (0, 0)),
    )

    out = pl.pallas_call(
        net_kernel,
        out_shape=jax.ShapeDtypeStruct((1, n * seq), x.dtype),
        grid_spec=grid_spec,
        compiler_params=pltpu.CompilerParams(
            dimension_semantics=("arbitrary",)),
    )(*ins)
    # (1, N*L) -> (N, L)  == flatten(start_dim=1) of the (N, 1, L) conv output
    return out.reshape(n, seq)


# ---- plain-JAX reference (for a correctness check) ---------------------------
def conv1d_ref(x, w, b, pad):
    # w: PyTorch layout (Cout, Cin, K) == 'OIH'
    y = jax.lax.conv_general_dilated(
        x, w, window_strides=(1,), padding=[(pad, pad)],
        dimension_numbers=('NCH', 'OIH', 'NCH'))
    return y + b.reshape(1, -1, 1)


def net_ref(x, params):
    (w1, b1, w2, b2, w3, b3, w4, b4) = params
    h = jax.nn.relu(conv1d_ref(x, w1, b1, P1))
    h = jax.nn.relu(conv1d_ref(h, w2, b2, P2))
    h = jax.nn.relu(conv1d_ref(h, w3, b3, P3))
    h = jax.nn.sigmoid(conv1d_ref(h, w4, b4, P4))
    return h.reshape(x.shape[0], -1)


def init_params(key):
    def layer(key, cout, cin, k):
        kw, kb = jax.random.split(key)
        bound = 1.0 / jnp.sqrt(cin * k)
        w = jax.random.uniform(kw, (cout, cin, k), jnp.float32, -bound, bound)
        b = jax.random.uniform(kb, (cout,), jnp.float32, -bound, bound)
        return w, b

    k1, k2, k3, k4 = jax.random.split(key, 4)
    w1, b1 = layer(k1, C1, C_IN, K1)
    w2, b2 = layer(k2, C2, C1, K2)
    w3, b3 = layer(k3, C3, C2, K3)
    w4, b4 = layer(k4, C4, C3, K4)
    return (w1, b1, w2, b2, w3, b3, w4, b4)


if __name__ == "__main__":
    key = jax.random.PRNGKey(0)
    kp, kx = jax.random.split(key)
    params = init_params(kp)
    x = jax.random.normal(kx, (N, C_IN, L), jnp.float32)

    out = jax.block_until_ready(net_forward(x, params))

    ref = net_ref(x, params)
    assert out.shape == (N, L)
    assert jnp.allclose(out, ref, rtol=1e-4, atol=1e-4), "mismatch vs reference"
    print("KERNEL_OK")
</pallas_src>

<mosaic_0001>
module attributes {stable_mosaic.version = 11 : i64} {
  func.func @net_kernel(%arg0: i32, %arg1: memref<4x32xf32, #tpu.memory_space<vmem>>, %arg2: memref<50x84xf32, #tpu.memory_space<vmem>>, %arg3: memref<50x1xf32, #tpu.memory_space<vmem>>, %arg4: memref<30x550xf32, #tpu.memory_space<vmem>>, %arg5: memref<30x1xf32, #tpu.memory_space<vmem>>, %arg6: memref<20x210xf32, #tpu.memory_space<vmem>>, %arg7: memref<20x1xf32, #tpu.memory_space<vmem>>, %arg8: memref<1x20xf32, #tpu.memory_space<vmem>>, %arg9: memref<1x1xf32, #tpu.memory_space<vmem>>, %arg10: memref<1x32xf32, #tpu.memory_space<vmem>>) attributes {dimension_semantics = [#tpu.dimension_semantics<arbitrary>], iteration_bounds = array<i64: 1>, scalar_prefetch = 0 : i64, scratch_operands = 0 : i64, tpu.core_type = #tpu.core_type<tc>, window_params = [{pipeline_mode = #tpu.pipeline_mode<synchronous>, transform_indices = @transform_0, window_bounds = array<i64: 4, 32>}, {pipeline_mode = #tpu.pipeline_mode<synchronous>, transform_indices = @transform_1, window_bounds = array<i64: 50, 84>}, {pipeline_mode = #tpu.pipeline_mode<synchronous>, transform_indices = @transform_2, window_bounds = array<i64: 50, 1>}, {pipeline_mode = #tpu.pipeline_mode<synchronous>, transform_indices = @transform_3, window_bounds = array<i64: 30, 550>}, {pipeline_mode = #tpu.pipeline_mode<synchronous>, transform_indices = @transform_4, window_bounds = array<i64: 30, 1>}, {pipeline_mode = #tpu.pipeline_mode<synchronous>, transform_indices = @transform_5, window_bounds = array<i64: 20, 210>}, {pipeline_mode = #tpu.pipeline_mode<synchronous>, transform_indices = @transform_6, window_bounds = array<i64: 20, 1>}, {pipeline_mode = #tpu.pipeline_mode<synchronous>, transform_indices = @transform_7, window_bounds = array<i64: 1, 20>}, {pipeline_mode = #tpu.pipeline_mode<synchronous>, transform_indices = @transform_8, window_bounds = array<i64: 1, 1>}, {pipeline_mode = #tpu.pipeline_mode<synchronous>, transform_indices = @transform_9, window_bounds = array<i64: 1, 32>}]} {
    %c0 = arith.constant 0 : index
    %c0_0 = arith.constant 0 : index
    %0 = vector.load %arg1[%c0, %c0_0] : memref<4x32xf32, #tpu.memory_space<vmem>>, vector<4x32xf32>
    %1 = vector.extract_strided_slice %0 {offsets = [0, 0], sizes = [4, 16], strides = [1, 1]} : vector<4x32xf32> to vector<4x16xf32>
    %cst = arith.constant 0.000000e+00 : f32
    %2 = vector.broadcast %cst : f32 to vector<4x10xf32>
    %3 = tpu.concatenate %2, %1, %2 in 1 : vector<4x10xf32>, vector<4x16xf32>, vector<4x10xf32> -> vector<4x36xf32>
    %4 = vector.extract_strided_slice %3 {offsets = [0, 0], sizes = [4, 16], strides = [1, 1]} : vector<4x36xf32> to vector<4x16xf32>
    %5 = vector.extract_strided_slice %3 {offsets = [0, 1], sizes = [4, 16], strides = [1, 1]} : vector<4x36xf32> to vector<4x16xf32>
    %6 = vector.extract_strided_slice %3 {offsets = [0, 2], sizes = [4, 16], strides = [1, 1]} : vector<4x36xf32> to vector<4x16xf32>
    %7 = vector.extract_strided_slice %3 {offsets = [0, 3], sizes = [4, 16], strides = [1, 1]} : vector<4x36xf32> to vector<4x16xf32>
    %8 = vector.extract_strided_slice %3 {offsets = [0, 4], sizes = [4, 16], strides = [1, 1]} : vector<4x36xf32> to vector<4x16xf32>
    %9 = vector.extract_strided_slice %3 {offsets = [0, 5], sizes = [4, 16], strides = [1, 1]} : vector<4x36xf32> to vector<4x16xf32>
    %10 = vector.extract_strided_slice %3 {offsets = [0, 6], sizes = [4, 16], strides = [1, 1]} : vector<4x36xf32> to vector<4x16xf32>
    %11 = vector.extract_strided_slice %3 {offsets = [0, 7], sizes = [4, 16], strides = [1, 1]} : vector<4x36xf32> to vector<4x16xf32>
    %12 = vector.extract_strided_slice %3 {offsets = [0, 8], sizes = [4, 16], strides = [1, 1]} : vector<4x36xf32> to vector<4x16xf32>
    %13 = vector.extract_strided_slice %3 {offsets = [0, 9], sizes = [4, 16], strides = [1, 1]} : vector<4x36xf32> to vector<4x16xf32>
    %14 = vector.extract_strided_slice %3 {offsets = [0, 10], sizes = [4, 16], strides = [1, 1]} : vector<4x36xf32> to vector<4x16xf32>
    %15 = vector.extract_strided_slice %3 {offsets = [0, 11], sizes = [4, 16], strides = [1, 1]} : vector<4x36xf32> to vector<4x16xf32>
    %16 = vector.extract_strided_slice %3 {offsets = [0, 12], sizes = [4, 16], strides = [1, 1]} : vector<4x36xf32> to vector<4x16xf32>
    %17 = vector.extract_strided_slice %3 {offsets = [0, 13], sizes = [4, 16], strides = [1, 1]} : vector<4x36xf32> to vector<4x16xf32>
    %18 = vector.extract_strided_slice %3 {offsets = [0, 14], sizes = [4, 16], strides = [1, 1]} : vector<4x36xf32> to vector<4x16xf32>
    %19 = vector.extract_strided_slice %3 {offsets = [0, 15], sizes = [4, 16], strides = [1, 1]} : vector<4x36xf32> to vector<4x16xf32>
    %20 = vector.extract_strided_slice %3 {offsets = [0, 16], sizes = [4, 16], strides = [1, 1]} : vector<4x36xf32> to vector<4x16xf32>
    %21 = vector.extract_strided_slice %3 {offsets = [0, 17], sizes = [4, 16], strides = [1, 1]} : vector<4x36xf32> to vector<4x16xf32>
    %22 = vector.extract_strided_slice %3 {offsets = [0, 18], sizes = [4, 16], strides = [1, 1]} : vector<4x36xf32> to vector<4x16xf32>
    %23 = vector.extract_strided_slice %3 {offsets = [0, 19], sizes = [4, 16], strides = [1, 1]} : vector<4x36xf32> to vector<4x16xf32>
    %24 = vector.extract_strided_slice %3 {offsets = [0, 20], sizes = [4, 16], strides = [1, 1]} : vector<4x36xf32> to vector<4x16xf32>
    %25 = tpu.concatenate %4, %5, %6, %7, %8, %9, %10, %11, %12, %13, %14, %15, %16, %17, %18, %19 in 0 : vector<4x16xf32>, vector<4x16xf32>, vector<4x16xf32>, vector<4x16xf32>, vector<4x16xf32>, vector<4x16xf32>, vector<4x16xf32>, vector<4x16xf32>, vector<4x16xf32>, vector<4x16xf32>, vector<4x16xf32>, vector<4x16xf32>, vector<4x16xf32>, vector<4x16xf32>, vector<4x16xf32>, vector<4x16xf32> -> vector<64x16xf32>
    %26 = tpu.concatenate %20, %21, %22, %23, %24 in 0 : vector<4x16xf32>, vector<4x16xf32>, vector<4x16xf32>, vector<4x16xf32>, vector<4x16xf32> -> vector<20x16xf32>
    %27 = tpu.concatenate %25, %26 in 0 : vector<64x16xf32>, vector<20x16xf32> -> vector<84x16xf32>
    %28 = vector.extract_strided_slice %0 {offsets = [0, 16], sizes = [4, 16], strides = [1, 1]} : vector<4x32xf32> to vector<4x16xf32>
    %cst_1 = arith.constant 0.000000e+00 : f32
    %29 = vector.broadcast %cst_1 : f32 to vector<4x10xf32>
    %30 = tpu.concatenate %29, %28, %29 in 1 : vector<4x10xf32>, vector<4x16xf32>, vector<4x10xf32> -> vector<4x36xf32>
    %31 = vector.extract_strided_slice %30 {offsets = [0, 0], sizes = [4, 16], strides = [1, 1]} : vector<4x36xf32> to vector<4x16xf32>
    %32 = vector.extract_strided_slice %30 {offsets = [0, 1], sizes = [4, 16], strides = [1, 1]} : vector<4x36xf32> to vector<4x16xf32>
    %33 = vector.extract_strided_slice %30 {offsets = [0, 2], sizes = [4, 16], strides = [1, 1]} : vector<4x36xf32> to vector<4x16xf32>
    %34 = vector.extract_strided_slice %30 {offsets = [0, 3], sizes = [4, 16], strides = [1, 1]} : vector<4x36xf32> to vector<4x16xf32>
    %35 = vector.extract_strided_slice %30 {offsets = [0, 4], sizes = [4, 16], strides = [1, 1]} : vector<4x36xf32> to vector<4x16xf32>
    %36 = vector.extract_strided_slice %30 {offsets = [0, 5], sizes = [4, 16], strides = [1, 1]} : vector<4x36xf32> to vector<4x16xf32>
    %37 = vector.extract_strided_slice %30 {offsets = [0, 6], sizes = [4, 16], strides = [1, 1]} : vector<4x36xf32> to vector<4x16xf32>
    %38 = vector.extract_strided_slice %30 {offsets = [0, 7], sizes = [4, 16], strides = [1, 1]} : vector<4x36xf32> to vector<4x16xf32>
    %39 = vector.extract_strided_slice %30 {offsets = [0, 8], sizes = [4, 16], strides = [1, 1]} : vector<4x36xf32> to vector<4x16xf32>
    %40 = vector.extract_strided_slice %30 {offsets = [0, 9], sizes = [4, 16], strides = [1, 1]} : vector<4x36xf32> to vector<4x16xf32>
    %41 = vector.extract_strided_slice %30 {offsets = [0, 10], sizes = [4, 16], strides = [1, 1]} : vector<4x36xf32> to vector<4x16xf32>
    %42 = vector.extract_strided_slice %30 {offsets = [0, 11], sizes = [4, 16], strides = [1, 1]} : vector<4x36xf32> to vector<4x16xf32>
    %43 = vector.extract_strided_slice %30 {offsets = [0, 12], sizes = [4, 16], strides = [1, 1]} : vector<4x36xf32> to vector<4x16xf32>
    %44 = vector.extract_strided_slice %30 {offsets = [0, 13], sizes = [4, 16], strides = [1, 1]} : vector<4x36xf32> to vector<4x16xf32>
    %45 = vector.extract_strided_slice %30 {offsets = [0, 14], sizes = [4, 16], strides = [1, 1]} : vector<4x36xf32> to vector<4x16xf32>
    %46 = vector.extract_strided_slice %30 {offsets = [0, 15], sizes = [4, 16], strides = [1, 1]} : vector<4x36xf32> to vector<4x16xf32>
    %47 = vector.extract_strided_slice %30 {offsets = [0, 16], sizes = [4, 16], strides = [1, 1]} : vector<4x36xf32> to vector<4x16xf32>
    %48 = vector.extract_strided_slice %30 {offsets = [0, 17], sizes = [4, 16], strides = [1, 1]} : vector<4x36xf32> to vector<4x16xf32>
    %49 = vector.extract_strided_slice %30 {offsets = [0, 18], sizes = [4, 16], strides = [1, 1]} : vector<4x36xf32> to vector<4x16xf32>
    %50 = vector.extract_strided_slice %30 {offsets = [0, 19], sizes = [4, 16], strides = [1, 1]} : vector<4x36xf32> to vector<4x16xf32>
    %51 = vector.extract_strided_slice %30 {offsets = [0, 20], sizes = [4, 16], strides = [1, 1]} : vector<4x36xf32> to vector<4x16xf32>
    %52 = tpu.concatenate %31, %32, %33, %34, %35, %36, %37, %38, %39, %40, %41, %42, %43, %44, %45, %46 in 0 : vector<4x16xf32>, vector<4x16xf32>, vector<4x16xf32>, vector<4x16xf32>, vector<4x16xf32>, vector<4x16xf32>, vector<4x16xf32>, vector<4x16xf32>, vector<4x16xf32>, vector<4x16xf32>, vector<4x16xf32>, vector<4x16xf32>, vector<4x16xf32>, vector<4x16xf32>, vector<4x16xf32>, vector<4x16xf32> -> vector<64x16xf32>
    %53 = tpu.concatenate %47, %48, %49, %50, %51 in 0 : vector<4x16xf32>, vector<4x16xf32>, vector<4x16xf32>, vector<4x16xf32>, vector<4x16xf32> -> vector<20x16xf32>
    %54 = tpu.concatenate %52, %53 in 0 : vector<64x16xf32>, vector<20x16xf32> -> vector<84x16xf32>
    %55 = tpu.concatenate %27, %54 in 1 : vector<84x16xf32>, vector<84x16xf32> -> vector<84x32xf32>
    %c0_2 = arith.constant 0 : index
    %c0_3 = arith.constant 0 : index
    %56 = vector.load %arg2[%c0_2, %c0_3] : memref<50x84xf32, #tpu.memory_space<vmem>>, vector<50x84xf32>
    %cst_4 = arith.constant dense<0.000000e+00> : vector<50x32xf32>
    %57 = tpu.matmul %56, %55, %cst_4 {dimension_numbers = #tpu.dot_dimension_numbers<[1], [0], [0], [1], [0, 0, 1, 1], [], []>} : vector<50x84xf32>, vector<84x32xf32>, vector<50x32xf32> -> vector<50x32xf32>
    %c0_5 = arith.constant 0 : index
    %c0_6 = arith.constant 0 : index
    %58 = vector.load %arg3[%c0_5, %c0_6] : memref<50x1xf32, #tpu.memory_space<vmem>>, vector<50x1xf32>
    %59 = vector.broadcast %58 : vector<50x1xf32> to vector<50x32xf32>
    %60 = arith.addf %57, %59 : vector<50x32xf32>
    %cst_7 = arith.constant 0.000000e+00 : f32
    %61 = vector.broadcast %cst_7 : f32 to vector<50x32xf32>
    %62 = arith.maximumf %60, %61 : vector<50x32xf32>
    %63 = vector.extract_strided_slice %62 {offsets = [0, 0], sizes = [50, 16], strides = [1, 1]} : vector<50x32xf32> to vector<50x16xf32>
    %cst_8 = arith.constant 0.000000e+00 : f32
    %64 = vector.broadcast %cst_8 : f32 to vector<50x5xf32>
    %65 = tpu.concatenate %64, %63, %64 in 1 : vector<50x5xf32>, vector<50x16xf32>, vector<50x5xf32> -> vector<50x26xf32>
    %66 = vector.extract_strided_slice %65 {offsets = [0, 0], sizes = [50, 16], strides = [1, 1]} : vector<50x26xf32> to vector<50x16xf32>
    %67 = vector.extract_strided_slice %65 {offsets = [0, 1], sizes = [50, 16], strides = [1, 1]} : vector<50x26xf32> to vector<50x16xf32>
    %68 = vector.extract_strided_slice %65 {offsets = [0, 2], sizes = [50, 16], strides = [1, 1]} : vector<50x26xf32> to vector<50x16xf32>
    %69 = vector.extract_strided_slice %65 {offsets = [0, 3], sizes = [50, 16], strides = [1, 1]} : vector<50x26xf32> to vector<50x16xf32>
    %70 = vector.extract_strided_slice %65 {offsets = [0, 4], sizes = [50, 16], strides = [1, 1]} : vector<50x26xf32> to vector<50x16xf32>
    %71 = vector.extract_strided_slice %65 {offsets = [0, 5], sizes = [50, 16], strides = [1, 1]} : vector<50x26xf32> to vector<50x16xf32>
    %72 = vector.extract_strided_slice %65 {offsets = [0, 6], sizes = [50, 16], strides = [1, 1]} : vector<50x26xf32> to vector<50x16xf32>
    %73 = vector.extract_strided_slice %65 {offsets = [0, 7], sizes = [50, 16], strides = [1, 1]} : vector<50x26xf32> to vector<50x16xf32>
    %74 = vector.extract_strided_slice %65 {offsets = [0, 8], sizes = [50, 16], strides = [1, 1]} : vector<50x26xf32> to vector<50x16xf32>
    %75 = vector.extract_strided_slice %65 {offsets = [0, 9], sizes = [50, 16], strides = [1, 1]} : vector<50x26xf32> to vector<50x16xf32>
    %76 = vector.extract_strided_slice %65 {offsets = [0, 10], sizes = [50, 16], strides = [1, 1]} : vector<50x26xf32> to vector<50x16xf32>
    %77 = tpu.concatenate %66, %67, %68, %69, %70, %71, %72, %73, %74, %75, %76 in 0 : vector<50x16xf32>, vector<50x16xf32>, vector<50x16xf32>, vector<50x16xf32>, vector<50x16xf32>, vector<50x16xf32>, vector<50x16xf32>, vector<50x16xf32>, vector<50x16xf32>, vector<50x16xf32>, vector<50x16xf32> -> vector<550x16xf32>
    %78 = vector.extract_strided_slice %62 {offsets = [0, 16], sizes = [50, 16], strides = [1, 1]} : vector<50x32xf32> to vector<50x16xf32>
    %cst_9 = arith.constant 0.000000e+00 : f32
    %79 = vector.broadcast %cst_9 : f32 to vector<50x5xf32>
    %80 = tpu.concatenate %79, %78, %79 in 1 : vector<50x5xf32>, vector<50x16xf32>, vector<50x5xf32> -> vector<50x26xf32>
    %81 = vector.extract_strided_slice %80 {offsets = [0, 0], sizes = [50, 16], strides = [1, 1]} : vector<50x26xf32> to vector<50x16xf32>
    %82 = vector.extract_strided_slice %80 {offsets = [0, 1], sizes = [50, 16], strides = [1, 1]} : vector<50x26xf32> to vector<50x16xf32>
    %83 = vector.extract_strided_slice %80 {offsets = [0, 2], sizes = [50, 16], strides = [1, 1]} : vector<50x26xf32> to vector<50x16xf32>
    %84 = vector.extract_strided_slice %80 {offsets = [0, 3], sizes = [50, 16], strides = [1, 1]} : vector<50x26xf32> to vector<50x16xf32>
    %85 = vector.extract_strided_slice %80 {offsets = [0, 4], sizes = [50, 16], strides = [1, 1]} : vector<50x26xf32> to vector<50x16xf32>
    %86 = vector.extract_strided_slice %80 {offsets = [0, 5], sizes = [50, 16], strides = [1, 1]} : vector<50x26xf32> to vector<50x16xf32>
    %87 = vector.extract_strided_slice %80 {offsets = [0, 6], sizes = [50, 16], strides = [1, 1]} : vector<50x26xf32> to vector<50x16xf32>
    %88 = vector.extract_strided_slice %80 {offsets = [0, 7], sizes = [50, 16], strides = [1, 1]} : vector<50x26xf32> to vector<50x16xf32>
    %89 = vector.extract_strided_slice %80 {offsets = [0, 8], sizes = [50, 16], strides = [1, 1]} : vector<50x26xf32> to vector<50x16xf32>
    %90 = vector.extract_strided_slice %80 {offsets = [0, 9], sizes = [50, 16], strides = [1, 1]} : vector<50x26xf32> to vector<50x16xf32>
    %91 = vector.extract_strided_slice %80 {offsets = [0, 10], sizes = [50, 16], strides = [1, 1]} : vector<50x26xf32> to vector<50x16xf32>
    %92 = tpu.concatenate %81, %82, %83, %84, %85, %86, %87, %88, %89, %90, %91 in 0 : vector<50x16xf32>, vector<50x16xf32>, vector<50x16xf32>, vector<50x16xf32>, vector<50x16xf32>, vector<50x16xf32>, vector<50x16xf32>, vector<50x16xf32>, vector<50x16xf32>, vector<50x16xf32>, vector<50x16xf32> -> vector<550x16xf32>
    %93 = tpu.concatenate %77, %92 in 1 : vector<550x16xf32>, vector<550x16xf32> -> vector<550x32xf32>
    %c0_10 = arith.constant 0 : index
    %c0_11 = arith.constant 0 : index
    %94 = vector.load %arg4[%c0_10, %c0_11] : memref<30x550xf32, #tpu.memory_space<vmem>>, vector<30x550xf32>
    %cst_12 = arith.constant dense<0.000000e+00> : vector<30x32xf32>
    %95 = tpu.matmul %94, %93, %cst_12 {dimension_numbers = #tpu.dot_dimension_numbers<[1], [0], [0], [1], [0, 0, 1, 1], [], []>} : vector<30x550xf32>, vector<550x32xf32>, vector<30x32xf32> -> vector<30x32xf32>
    %c0_13 = arith.constant 0 : index
    %c0_14 = arith.constant 0 : index
    %96 = vector.load %arg5[%c0_13, %c0_14] : memref<30x1xf32, #tpu.memory_space<vmem>>, vector<30x1xf32>
    %97 = vector.broadcast %96 : vector<30x1xf32> to vector<30x32xf32>
    %98 = arith.addf %95, %97 : vector<30x32xf32>
    %cst_15 = arith.constant 0.000000e+00 : f32
    %99 = vector.broadcast %cst_15 : f32 to vector<30x32xf32>
    %100 = arith.maximumf %98, %99 : vector<30x32xf32>
    %101 = vector.extract_strided_slice %100 {offsets = [0, 0], sizes = [30, 16], strides = [1, 1]} : vector<30x32xf32> to vector<30x16xf32>
    %cst_16 = arith.constant 0.000000e+00 : f32
    %102 = vector.broadcast %cst_16 : f32 to vector<30x3xf32>
    %103 = tpu.concatenate %102, %101, %102 in 1 : vector<30x3xf32>, vector<30x16xf32>, vector<30x3xf32> -> vector<30x22xf32>
    %104 = vector.extract_strided_slice %103 {offsets = [0, 0], sizes = [30, 16], strides = [1, 1]} : vector<30x22xf32> to vector<30x16xf32>
    %105 = vector.extract_strided_slice %103 {offsets = [0, 1], sizes = [30, 16], strides = [1, 1]} : vector<30x22xf32> to vector<30x16xf32>
    %106 = vector.extract_strided_slice %103 {offsets = [0, 2], sizes = [30, 16], strides = [1, 1]} : vector<30x22xf32> to vector<30x16xf32>
    %107 = vector.extract_strided_slice %103 {offsets = [0, 3], sizes = [30, 16], strides = [1, 1]} : vector<30x22xf32> to vector<30x16xf32>
    %108 = vector.extract_strided_slice %103 {offsets = [0, 4], sizes = [30, 16], strides = [1, 1]} : vector<30x22xf32> to vector<30x16xf32>
    %109 = vector.extract_strided_slice %103 {offsets = [0, 5], sizes = [30, 16], strides = [1, 1]} : vector<30x22xf32> to vector<30x16xf32>
    %110 = vector.extract_strided_slice %103 {offsets = [0, 6], sizes = [30, 16], strides = [1, 1]} : vector<30x22xf32> to vector<30x16xf32>
    %111 = tpu.concatenate %104, %105, %106, %107, %108, %109, %110 in 0 : vector<30x16xf32>, vector<30x16xf32>, vector<30x16xf32>, vector<30x16xf32>, vector<30x16xf32>, vector<30x16xf32>, vector<30x16xf32> -> vector<210x16xf32>
    %112 = vector.extract_strided_slice %100 {offsets = [0, 16], sizes = [30, 16], strides = [1, 1]} : vector<30x32xf32> to vector<30x16xf32>
    %cst_17 = arith.constant 0.000000e+00 : f32
    %113 = vector.broadcast %cst_17 : f32 to vector<30x3xf32>
    %114 = tpu.concatenate %113, %112, %113 in 1 : vector<30x3xf32>, vector<30x16xf32>, vector<30x3xf32> -> vector<30x22xf32>
    %115 = vector.extract_strided_slice %114 {offsets = [0, 0], sizes = [30, 16], strides = [1, 1]} : vector<30x22xf32> to vector<30x16xf32>
    %116 = vector.extract_strided_slice %114 {offsets = [0, 1], sizes = [30, 16], strides = [1, 1]} : vector<30x22xf32> to vector<30x16xf32>
    %117 = vector.extract_strided_slice %114 {offsets = [0, 2], sizes = [30, 16], strides = [1, 1]} : vector<30x22xf32> to vector<30x16xf32>
    %118 = vector.extract_strided_slice %114 {offsets = [0, 3], sizes = [30, 16], strides = [1, 1]} : vector<30x22xf32> to vector<30x16xf32>
    %119 = vector.extract_strided_slice %114 {offsets = [0, 4], sizes = [30, 16], strides = [1, 1]} : vector<30x22xf32> to vector<30x16xf32>
    %120 = vector.extract_strided_slice %114 {offsets = [0, 5], sizes = [30, 16], strides = [1, 1]} : vector<30x22xf32> to vector<30x16xf32>
    %121 = vector.extract_strided_slice %114 {offsets = [0, 6], sizes = [30, 16], strides = [1, 1]} : vector<30x22xf32> to vector<30x16xf32>
    %122 = tpu.concatenate %115, %116, %117, %118, %119, %120, %121 in 0 : vector<30x16xf32>, vector<30x16xf32>, vector<30x16xf32>, vector<30x16xf32>, vector<30x16xf32>, vector<30x16xf32>, vector<30x16xf32> -> vector<210x16xf32>
    %123 = tpu.concatenate %111, %122 in 1 : vector<210x16xf32>, vector<210x16xf32> -> vector<210x32xf32>
    %c0_18 = arith.constant 0 : index
    %c0_19 = arith.constant 0 : index
    %124 = vector.load %arg6[%c0_18, %c0_19] : memref<20x210xf32, #tpu.memory_space<vmem>>, vector<20x210xf32>
    %cst_20 = arith.constant dense<0.000000e+00> : vector<20x32xf32>
    %125 = tpu.matmul %124, %123, %cst_20 {dimension_numbers = #tpu.dot_dimension_numbers<[1], [0], [0], [1], [0, 0, 1, 1], [], []>} : vector<20x210xf32>, vector<210x32xf32>, vector<20x32xf32> -> vector<20x32xf32>
    %c0_21 = arith.constant 0 : index
    %c0_22 = arith.constant 0 : index
    %126 = vector.load %arg7[%c0_21, %c0_22] : memref<20x1xf32, #tpu.memory_space<vmem>>, vector<20x1xf32>
    %127 = vector.broadcast %126 : vector<20x1xf32> to vector<20x32xf32>
    %128 = arith.addf %125, %127 : vector<20x32xf32>
    %cst_23 = arith.constant 0.000000e+00 : f32
    %129 = vector.broadcast %cst_23 : f32 to vector<20x32xf32>
    %130 = arith.maximumf %128, %129 : vector<20x32xf32>
    %c0_24 = arith.constant 0 : index
    %c0_25 = arith.constant 0 : index
    %131 = vector.load %arg8[%c0_24, %c0_25] : memref<1x20xf32, #tpu.memory_space<vmem>>, vector<1x20xf32>
    %cst_26 = arith.constant dense<0.000000e+00> : vector<1x32xf32>
    %132 = tpu.matmul %131, %130, %cst_26 {dimension_numbers = #tpu.dot_dimension_numbers<[1], [0], [0], [1], [0, 0, 1, 1], [], []>} : vector<1x20xf32>, vector<20x32xf32>, vector<1x32xf32> -> vector<1x32xf32>
    %c0_27 = arith.constant 0 : index
    %c0_28 = arith.constant 0 : index
    %133 = vector.load %arg9[%c0_27, %c0_28] : memref<1x1xf32, #tpu.memory_space<vmem>>, vector<1x1xf32>
    %134 = vector.broadcast %133 : vector<1x1xf32> to vector<1x32xf32>
    %135 = arith.addf %132, %134 : vector<1x32xf32>
    %136 = arith.negf %135 : vector<1x32xf32>
    %137 = math.exp %136 : vector<1x32xf32>
    %cst_29 = arith.constant 1.000000e+00 : f32
    %138 = vector.broadcast %cst_29 : f32 to vector<1x32xf32>
    %139 = arith.addf %138, %137 : vector<1x32xf32>
    %140 = arith.divf %138, %139 : vector<1x32xf32>
    %c0_30 = arith.constant 0 : index
    %c0_31 = arith.constant 0 : index
    %141 = vector.load %arg10[%c0_30, %c0_31] : memref<1x32xf32, #tpu.memory_space<vmem>>, vector<1x32xf32>
    tpu.vector_store %arg10[%c0_30, %c0_31], %140 {strides = array<i32>} : memref<1x32xf32, #tpu.memory_space<vmem>>, vector<1x32xf32>,
    return
  }
  func.func @transform_0(%arg0: i32) -> (i32, i32) {
    %c0_i32 = arith.constant 0 : i32
    %c0_i32_0 = arith.constant 0 : i32
    %c0_i32_1 = arith.constant 0 : i32
    return %c0_i32, %c0_i32_0 : i32, i32
  }
  func.func @transform_1(%arg0: i32) -> (i32, i32) {
    %c0_i32 = arith.constant 0 : i32
    %c0_i32_0 = arith.constant 0 : i32
    %c0_i32_1 = arith.constant 0 : i32
    return %c0_i32, %c0_i32_0 : i32, i32
  }
  func.func @transform_2(%arg0: i32) -> (i32, i32) {
    %c0_i32 = arith.constant 0 : i32
    %c0_i32_0 = arith.constant 0 : i32
    %c0_i32_1 = arith.constant 0 : i32
    return %c0_i32, %c0_i32_0 : i32, i32
  }
  func.func @transform_3(%arg0: i32) -> (i32, i32) {
    %c0_i32 = arith.constant 0 : i32
    %c0_i32_0 = arith.constant 0 : i32
    %c0_i32_1 = arith.constant 0 : i32
    return %c0_i32, %c0_i32_0 : i32, i32
  }
  func.func @transform_4(%arg0: i32) -> (i32, i32) {
    %c0_i32 = arith.constant 0 : i32
    %c0_i32_0 = arith.constant 0 : i32
    %c0_i32_1 = arith.constant 0 : i32
    return %c0_i32, %c0_i32_0 : i32, i32
  }
  func.func @transform_5(%arg0: i32) -> (i32, i32) {
    %c0_i32 = arith.constant 0 : i32
    %c0_i32_0 = arith.constant 0 : i32
    %c0_i32_1 = arith.constant 0 : i32
    return %c0_i32, %c0_i32_0 : i32, i32
  }
  func.func @transform_6(%arg0: i32) -> (i32, i32) {
    %c0_i32 = arith.constant 0 : i32
    %c0_i32_0 = arith.constant 0 : i32
    %c0_i32_1 = arith.constant 0 : i32
    return %c0_i32, %c0_i32_0 : i32, i32
  }
  func.func @transform_7(%arg0: i32) -> (i32, i32) {
    %c0_i32 = arith.constant 0 : i32
    %c0_i32_0 = arith.constant 0 : i32
    %c0_i32_1 = arith.constant 0 : i32
    return %c0_i32, %c0_i32_0 : i32, i32
  }
  func.func @transform_8(%arg0: i32) -> (i32, i32) {
    %c0_i32 = arith.constant 0 : i32
    %c0_i32_0 = arith.constant 0 : i32
    %c0_i32_1 = arith.constant 0 : i32
    return %c0_i32, %c0_i32_0 : i32, i32
  }
  func.func @transform_9(%arg0: i32) -> (i32, i32) {
    %c0_i32 = arith.constant 0 : i32
    %c0_i32_0 = arith.constant 0 : i32
    %c0_i32_1 = arith.constant 0 : i32
    return %c0_i32, %c0_i32_0 : i32, i32
  }
}

</mosaic_0001>

<bundles_post_ra>
// kernel: net_forward.1
= control target key start
LH: loop header
LB: loop body
LE: loop exit
PB: predicated region body
PF: predicated region fallthrough
CT: control target
= control target key end

     0   :  { %s2391_s11 = smov 122   ;;  %s2392_s12 = smov 10   ;;  %vm39_vm0 = vcmask 80896   ;;  %vm41_vm1 = vcmask 211968   ;;  %vm90_vm2 = vcmask 1043456   ;;  %v4155_v34 = vmov 0.0   ;;  %s4143_s0 = inlined_call_operand.vmem [shape: f32[4,32], index: 0, kind: input, shape index: {}]   ;;  %s4144_s2 = inlined_call_operand.vmem [shape: f32[50,1], index: 2, kind: input, shape index: {}]   ;;  %s4145_s1 = inlined_call_operand.vmem [shape: f32[50,84], index: 1, kind: input, shape index: {}]   ;;  %s4146_s3 = inlined_call_operand.vmem [shape: f32[30,550], index: 3, kind: input, shape index: {}]   ;;  %s4147_s4 = inlined_call_operand.vmem [shape: f32[30,1], index: 4, kind: input, shape index: {}]   ;;  %s4148_s8 = inlined_call_operand.<no memory space> [shape: f32[1,1], index: 8, kind: input, shape index: {}]   ;;  %s4149_s5 = inlined_call_operand.vmem [shape: f32[20,210], index: 5, kind: input, shape index: {}]   ;;  %s4150_s6 = inlined_call_operand.vmem [shape: f32[20,1], index: 6, kind: input, shape index: {}]   ;;  %s4151_s7 = inlined_call_operand.vmem [shape: f32[1,20], index: 7, kind: input, shape index: {}]   ;;  %s4152_s9 = inlined_call_operand.vmem [shape: f32[1,32], index: 9, kind: output, shape index: {}]  }
   0x1   :  { %v34_v0 = vld [vmem:[%s4143_s0] sm:$0xf]  ;;  %s2393_s13 = smov 124   ;;  %s2394_s14 = smov 125   ;;  %2294 = vmatprep.subr.mxu0 %v4155_v34  ;;  %vm2410_vm3 = vmmov 0   ;;  %v2411_v42 = vmov 0  }
   0x2   :  { %110 = vrot.lane.b32.xlu0 %v34_v0, %s2391_s11  ;;  %s2395_s0 = smov 126   ;;  %s2396_s15 = smov 127   ;;  %2316 = vmatprep.mubr.msk.f32.mxu0 %vm2410_vm3, %v4155_v34  ;;  %v236_v43 = vld [vmem:[%s4144_s2] sm:$0xff]  ;;  %v237_v44 = vld [vmem:[%s4144_s2 + $0x8] sm:$0xff]  ;;  %v239_v45 = vld [vmem:[%s4144_s2 + $0x18] sm:$0xff]  ;;  %vm217_vm4 = vcmask 130048  }
   0x3   :  { %s2397_s16 = smov 114   ;;  %s2398_s17 = smov 113   ;;  %2385 = vset.pattern.permute.xlu1 %v2411_v42  ;;  %2386 = vset.pattern.permute.xlu0 %v2411_v42  ;;  %v241_v46 = vld [vmem:[%s4144_s2 + $0x28] sm:$0xff]  ;;  %v240_v47 = vld [vmem:[%s4144_s2 + $0x20] sm:$0xff]  ;;  %v238_v48 = vld [vmem:[%s4144_s2 + $0x10] sm:$0xff]  ;;  %vm278_vm5 = vcmask 687104  }
   0x4   :  { %s2399_s18 = smov 116   ;;  %s4153_s19 = smov 115   ;;  %v242_v49 = vld [vmem:[%s4144_s2 + $0x30] sm:$0x3]  ;;  %vm438_vm6 = vcmask 39936   ;;  %vm446_vm7 = vcmask 171008  }
   0x5   :  { %s2401_s20 = smov 112   ;;  %s2402_s21 = smov 118   ;;  %vm530_vm8 = vcmask 1045504   ;;  %vm461_vm9 = vcmask 1041408   ;;  %vm1292_vm10 = vcmask 310272   ;;  %vm1583_vm11 = vcmask 23552  }
   0x6   :  { %36 = vrot.lane.b32.xlu0 %v34_v0, %s2392_s12  ;;  %s2403_s22 = smov 120   ;;  %s2404_s23 = smov 117   ;;  %vm1588_vm12 = vcmask 154624   ;;  %vm1959_vm13 = vcmask 670720   ;;  %vm2066_vm14 = vcmask 162816   ;;  %vm2149_vm15 = vcmask 253952  }
   0x7   :  { %s2405_s24 = smov 123   ;;  %s2406_s25 = smov 119  }
   0x8   :  { %s2407_s26 = smov 121   ;;  %s2408_s27 = smov 16  }
  0x74   :  { %v111_v1 = vpop.permute.xlu0 %110 }
  0x75   :  { %v113_v2 = vsel %vm39_vm0, 0.0, %v111_v1 }
  0x76   :  { %v114_v3 = vsel %vm41_vm1, %v113_v2, 0.0 }
  0x77   :  { %v116_v4 = vrot.slane %v114_v3, 4  ;;  %126 = vrot.lane.b32.xlu1 %v114_v3, %s2393_s13 }
  0x78   :  { %v37_v5 = vpop.permute.xlu0 %36 }
  0x79   :  { %123 = vrot.lane.b32.xlu0 %v116_v4, %s2394_s14  ;;  %v40_v6 = vsel %vm39_vm0, 0.0, %v37_v5 }
  0x7a   :  { %v2470_v7 = vsel %vm41_vm1, %v40_v6, 0.0 }
  0x7b   :  { %120 = vrot.lane.b32.xlu1 %v114_v3, %s2395_s0  ;;  %v44_v8 = vrot.slane %v2470_v7, 4 }
  0x7d   :  { %54 = vrot.lane.b32.xlu0 %v2470_v7, %s2393_s13 }
  0x7f   :  { %117 = vrot.lane.b32.xlu1 %v116_v4, %s2396_s15 }
  0x81   :  { %48 = vrot.lane.b32.xlu0 %v2470_v7, %s2395_s0 }
  0x83   :  { %156 = vrot.lane.b32.xlu1 %v114_v3, %s2397_s16 }
  0x85   :  { %159 = vrot.lane.b32.xlu0 %v116_v4, %s2398_s17 }
  0x87   :  { %150 = vrot.lane.b32.xlu1 %v114_v3, %s2399_s18 }
  0x89   :  { %153 = vrot.lane.b32.xlu0 %v116_v4, %s4153_s19 }
  0x8b   :  { %51 = vrot.lane.b32.xlu1 %v44_v8, %s2394_s14 }
  0x8f   :  { %45 = vrot.lane.b32.xlu1 %v44_v8, %s2396_s15 }
  0xe9   :  { %v2485_v9 = vpop.permute.xlu1 %126 }
  0xea   :  { %176 = vrot.lane.b32.xlu1 %v2485_v9, %s2401_s20 }
  0xeb   :  { %v124_v10 = vpop.permute.xlu0 %123 }
  0xed   :  { %v121_v11 = vpop.permute.xlu1 %120 }
  0xee   :  { %144 = vrot.lane.b32.xlu1 %v114_v3, %s2402_s21  ;;  %v163_v12 = vsel %vm90_vm2, %v121_v11, %v124_v10 }
  0xef   :  { %174 = vrot.lane.b32.xlu0 %v163_v12, %s2401_s20  ;;  %v2501_v15 = vpop.permute.xlu0 %54 }
  0xf1   :  { %v118_v13 = vpop.permute.xlu1 %117 }
  0xf2   :  { %138 = vrot.lane.b32.xlu1 %v114_v3, %s2403_s22  ;;  %v162_v14 = vsel %vm90_vm2, %v114_v3, %v118_v13 }
  0xf3   :  { %172 = vrot.lane.b32.xlu0 %v162_v14, %s2401_s20  ;;  %v49_v16 = vpop.permute.xlu0 %48 }
  0xf5   :  { %v157_v17 = vpop.permute.xlu1 %156 }
  0xf6   :  { %132 = vrot.lane.b32.xlu1 %v114_v3, %s2391_s11 }
  0xf7   :  { %147 = vrot.lane.b32.xlu0 %v116_v4, %s2404_s23  ;;  %v160_v18 = vpop.permute.xlu0 %159 }
  0xf8   :  { %v169_v26 = vsel %vm90_vm2, %v157_v17, %v160_v18 }
  0xf9   :  { %v151_v19 = vpop.permute.xlu1 %150 }
  0xfa   :  { %129 = vrot.lane.b32.xlu1 %v116_v4, %s2405_s24 }
  0xfb   :  { %141 = vrot.lane.b32.xlu0 %v116_v4, %s2406_s25  ;;  %v154_v20 = vpop.permute.xlu0 %153 }
  0xfc   :  { %v168_v22 = vsel %vm90_vm2, %v151_v19, %v154_v20 }
  0xfd   :  { %v52_v21 = vpop.permute.xlu1 %51 }
  0xfe   :  { %87 = vrot.lane.b32.xlu1 %v44_v8, %s2398_s17  ;;  %v2523_v23 = vsel %vm90_vm2, %v49_v16, %v52_v21 }
  0xff   :  { %135 = vrot.lane.b32.xlu0 %v116_v4, %s2407_s26 }
 0x101   :  { %v46_v24 = vpop.permute.xlu1 %45 }
 0x102   :  { %78 = vrot.lane.b32.xlu1 %v2470_v7, %s2399_s18  ;;  %v2529_v25 = vsel %vm90_vm2, %v2470_v7, %v46_v24 }
 0x103   :  { %105 = vrot.lane.b32.xlu0 %v2501_v15, %s2401_s20 }
 0x106   :  { %75 = vrot.lane.b32.xlu1 %v44_v8, %s2404_s23 }
 0x107   :  { %84 = vrot.lane.b32.xlu0 %v2470_v7, %s2397_s16  ;;  %s2412_s16 = smov 5  }
 0x10a   :  { %66 = vrot.lane.b32.xlu1 %v2470_v7, %s2403_s22 }
 0x10b   :  { %81 = vrot.lane.b32.xlu0 %v44_v8, %s4153_s19 }
 0x10e   :  { %63 = vrot.lane.b32.xlu1 %v44_v8, %s2407_s26 }
 0x10f   :  { %72 = vrot.lane.b32.xlu0 %v2470_v7, %s2402_s21 }
 0x112   :  { %57 = vrot.lane.b32.xlu1 %v44_v8, %s2405_s24 }
 0x113   :  { %69 = vrot.lane.b32.xlu0 %v44_v8, %s2406_s25 }
 0x116   :  { %196 = vrot.lane.b32.xlu1 %v168_v22, %s2408_s27 }
 0x117   :  { %60 = vrot.lane.b32.xlu0 %v2470_v7, %s2391_s11 }
 0x11b   :  { %103 = vrot.lane.b32.xlu0 %v2523_v23, %s2401_s20 }
 0x11f   :  { %101 = vrot.lane.b32.xlu0 %v2529_v25, %s2401_s20 }
 0x123   :  { %198 = vrot.lane.b32.xlu0 %v169_v26, %s2408_s27 }
 0x15c   :  { %v177_v27 = vpop.permute.xlu1 %176 }
 0x160   :  { %v145_v28 = vpop.permute.xlu1 %144 }
 0x161   :  { %v175_v29 = vpop.permute.xlu0 %174 }
 0x164   :  { %v139_v31 = vpop.permute.xlu1 %138 }
 0x165   :  { %v173_v30 = vpop.permute.xlu0 %172 }
 0x168   :  { %v133_v35 = vpop.permute.xlu1 %132 }
 0x169   :  { %v148_v32 = vpop.permute.xlu0 %147 }
 0x16a   :  { %v167_v33 = vsel %vm90_vm2, %v145_v28, %v148_v32  ;;  %v233_v32 = vld [vmem:[%s4145_s1 + $0x20] sm:$0xff] }
 0x16b   :  { %194 = vrot.lane.b32.xlu0 %v167_v33, %s2408_s27  ;;  %v234_v33 = vld [vmem:[%s4145_s1 + $0x28] sm:$0xff] }
 0x16c   :  { %v130_v40 = vpop.permute.xlu1 %129 }
 0x16d   :  { %v142_v36 = vpop.permute.xlu0 %141  ;;  %v164_v41 = vsel %vm90_vm2, %v2485_v9, %v130_v40 }
 0x16e   :  { %v166_v37 = vsel %vm90_vm2, %v139_v31, %v142_v36  ;;  %v231_v31 = vld [vmem:[%s4145_s1 + $0x10] sm:$0xff] }
 0x16f   :  { %192 = vrot.lane.b32.xlu1 %v166_v37, %s2408_s27 }
 0x170   :  { %v88_v50 = vpop.permute.xlu1 %87 }
 0x171   :  { %v136_v38 = vpop.permute.xlu0 %135 }
 0x172   :  { %v165_v39 = vsel %vm90_vm2, %v133_v35, %v136_v38  ;;  %v235_v35 = vld [vmem:[%s4145_s1 + $0x30] sm:$0x3] }
 0x173   :  { %186 = vrot.lane.b32.xlu1 %v163_v12, %s2408_s27  ;;  %190 = vrot.lane.b32.xlu0 %v165_v39, %s2408_s27 }
 0x174   :  { %v79_v52 = vpop.permute.xlu1 %78 }
 0x175   :  { %v106_v51 = vpop.permute.xlu0 %105 }
 0x177   :  { %204 = vrot.lane.b32.xlu1 %v177_v27, %s2408_s27  ;;  %188 = vrot.lane.b32.xlu0 %v164_v41, %s2408_s27 }
 0x178   :  { %v76_v54 = vpop.permute.xlu1 %75 }
 0x179   :  { %v85_v53 = vpop.permute.xlu0 %84 }
 0x17a   :  { %v98_v11 = vsel %vm90_vm2, %v85_v53, %v88_v50 }
 0x17b   :  { %202 = vrot.lane.b32.xlu1 %v175_v29, %s2408_s27  ;;  %184 = vrot.lane.b32.xlu0 %v162_v14, %s2408_s27 }
 0x17c   :  { %v67_v56 = vpop.permute.xlu1 %66 }
 0x17d   :  { %v82_v55 = vpop.permute.xlu0 %81 }
 0x17e   :  { %v97_v14 = vsel %vm90_vm2, %v79_v52, %v82_v55 }
 0x17f   :  { %200 = vrot.lane.b32.xlu1 %v173_v30, %s2408_s27  ;;  %250 = vperm.xlu0 %2386, %v237_v44   ;;  %v229_v30 = vld [vmem:[%s4145_s1] sm:$0xff] }
 0x180   :  { %v64_v58 = vpop.permute.xlu1 %63 }
 0x181   :  { %v73_v57 = vpop.permute.xlu0 %72 }
 0x182   :  { %v96_v17 = vsel %vm90_vm2, %v73_v57, %v76_v54 }
 0x183   :  { %245 = vperm.xlu1 %2385, %v236_v43   ;;  %270 = vperm.xlu0 %2386, %v241_v46  }
 0x184   :  { %v58_v60 = vpop.permute.xlu1 %57 }
 0x185   :  { %v70_v59 = vpop.permute.xlu0 %69  ;;  %v93_v26 = vsel %vm90_vm2, %v2501_v15, %v58_v60 }
 0x186   :  { %v95_v19 = vsel %vm90_vm2, %v67_v56, %v70_v59 }
 0x187   :  { %260 = vperm.xlu1 %2385, %v239_v45   ;;  %255 = vperm.xlu0 %2386, %v238_v48  }
 0x188   :  { %v197_v62 = vpop.permute.xlu1 %196 }
 0x189   :  { %v61_v61 = vpop.permute.xlu0 %60  ;;  %v224_v16 = vsel %vm217_vm4, %v97_v14, %v197_v62 }
 0x18a   :  { %v94_v22 = vsel %vm90_vm2, %v61_v61, %v64_v58 }
 0x18b   :  { %265 = vperm.xlu1 %2385, %v240_v47  }
 0x18d   :  { %v104_v63 = vpop.permute.xlu0 %103 }
 0x18f   :  { %275 = vperm.xlu1 %2385, %v242_v49  }
 0x191   :  { %v102_v1 = vpop.permute.xlu0 %101 }
 0x195   :  { %v199_v5 = vpop.permute.xlu0 %198 }
 0x196   :  { %v225_v13 = vsel %vm217_vm4, %v98_v11, %v199_v5 }
 0x1dd   :  { %v195_v8 = vpop.permute.xlu0 %194 }
 0x1de   :  { %v223_v18 = vsel %vm217_vm4, %v96_v17, %v195_v8 }
 0x1e1   :  { %v193_v0 = vpop.permute.xlu1 %192 }
 0x1e2   :  { %v222_v21 = vsel %vm217_vm4, %v95_v19, %v193_v0 }
 0x1e5   :  { %v187_v2 = vpop.permute.xlu1 %186  ;;  %v191_v12 = vpop.permute.xlu0 %190 }
 0x1e6   :  { %v221_v24 = vsel %vm217_vm4, %v94_v22, %v191_v12  ;;  %v219_v29 = vsel %vm217_vm4, %v2523_v23, %v187_v2  ;;  %v230_v23 = vld [vmem:[%s4145_s1 + $0x8] sm:$0xff] }
 0x1e9   :  { %v205_v3 = vpop.permute.xlu1 %204  ;;  %v189_v20 = vpop.permute.xlu0 %188 }
 0x1ea   :  { %v228_v4 = vsel %vm217_vm4, %v106_v51, %v205_v3  ;;  %v220_v27 = vsel %vm217_vm4, %v93_v26, %v189_v20 }
 0x1eb   :  { %2295 = vmatpush3.msk.msra.mxu0 %vm90_vm2, %v228_v4 }
 0x1ec   :  { %2296 = vmatprep.subr.mxu0 %v4155_v34 }
 0x1ed   :  { %v203_v6 = vpop.permute.xlu1 %202  ;;  %v185_v28 = vpop.permute.xlu0 %184 }
 0x1ee   :  { %v227_v7 = vsel %vm217_vm4, %v104_v63, %v203_v6  ;;  %v218_v15 = vsel %vm217_vm4, %v2529_v25, %v185_v28  ;;  %v232_v25 = vld [vmem:[%s4145_s1 + $0x18] sm:$0xff] }
 0x1ef   :  { %2297 = vmatpush3.msra.mxu0 %v227_v7 }
 0x1f0   :  { %2298 = vmatprep.subr.mxu0 %v4155_v34 }
 0x1f1   :  { %v201_v9 = vpop.permute.xlu1 %200 }
 0x1f2   :  { %v226_v10 = vsel %vm217_vm4, %v102_v1, %v201_v9 }
 0x1f3   :  { %2299 = vmatpush3.msra.mxu0 %v226_v10 }
 0x1f4   :  { %2300 = vmatprep.subr.mxu0 %v4155_v34 }
 0x1f5   :  { %2301 = vmatpush3.msra.mxu0 %v225_v13 }
 0x1f6   :  { %2302 = vmatprep.subr.mxu0 %v4155_v34 }
 0x1f7   :  { %2303 = vmatpush3.msra.mxu0 %v224_v16 }
 0x1f8   :  { %2304 = vmatprep.subr.mxu0 %v4155_v34 }
 0x1f9   :  { %2305 = vmatpush3.msra.mxu0 %v223_v18 }
 0x1fa   :  { %2306 = vmatprep.subr.mxu0 %v4155_v34  ;;  %v251_v36 = vpop.permute.xlu0 %250 }
 0x1fb   :  { %2307 = vmatpush3.msra.mxu0 %v222_v21 }
 0x1fc   :  { %2308 = vmatprep.subr.mxu0 %v4155_v34 }
 0x1fd   :  { %2309 = vmatpush3.msra.mxu0 %v221_v24 }
 0x1fe   :  { %2310 = vmatprep.subr.mxu0 %v4155_v34  ;;  %v246_v37 = vpop.permute.xlu1 %245  ;;  %v271_v39 = vpop.permute.xlu0 %270 }
 0x1ff   :  { %2311 = vmatpush3.msra.mxu0 %v220_v27 }
 0x200   :  { %2312 = vmatprep.subr.mxu0 %v4155_v34 }
 0x201   :  { %2313 = vmatpush3.msra.mxu0 %v219_v29 }
 0x202   :  { %2314 = vmatprep.subr.mxu0 %v4155_v34  ;;  %v256_v46 = vpop.permute.xlu0 %255  ;;  %v261_v50 = vpop.permute.xlu1 %260 }
 0x203   :  { %2315 = vmatpush3.msra.mxu0 %v218_v15 }
 0x204   :  { %2317 = vmatmul.mubr.msk.f32.vlgmr.msra.gmra.mxu0 %vm278_vm5, %v229_v30 }
 0x205   :  { %2319 = vmatprep.mubr.msk.f32.mxu0 %vm2410_vm3, %v4155_v34 }
 0x206   :  { %v266_v57 = vpop.permute.xlu1 %265 }
 0x208   :  { %2320 = vmatmul.mubr.msk.f32.gmra.mxu0 %vm278_vm5, %v230_v23 }
 0x209   :  { %2322 = vmatprep.mubr.msk.f32.mxu0 %vm2410_vm3, %v4155_v34 }
 0x20a   :  { %v276_v2 = vpop.permute.xlu1 %275 }
 0x20c   :  { %2323 = vmatmul.mubr.msk.f32.gmra.mxu0 %vm278_vm5, %v231_v31 }
 0x20d   :  { %2325 = vmatprep.mubr.msk.f32.mxu0 %vm2410_vm3, %v4155_v34 }
 0x210   :  { %2326 = vmatmul.mubr.msk.f32.gmra.mxu0 %vm278_vm5, %v232_v25 }
 0x211   :  { %2328 = vmatprep.mubr.msk.f32.mxu0 %vm2410_vm3, %v4155_v34 }
 0x214   :  { %2329 = vmatmul.mubr.msk.f32.gmra.mxu0 %vm278_vm5, %v233_v32 }
 0x215   :  { %2331 = vmatprep.mubr.msk.f32.mxu0 %vm2410_vm3, %v4155_v34 }
 0x218   :  { %2332 = vmatmul.mubr.msk.f32.gmra.mxu0 %vm278_vm5, %v234_v33 }
 0x219   :  { %2334 = vmatprep.mubr.msk.f32.mxu0 %vm2410_vm3, %v4155_v34 }
 0x21c   :  { %2335 = vmatmul.mubr.msk.f32.gmra.mxu0 %vm278_vm5, %v235_v35 }
 0x2c4   :  { %v369_v38 = vpop.f32.mrf.mxu0 }
 0x2c5   :  { %v370_v40 = vadd.f32 %v369_v38, %v246_v37 }
 0x2c6   :  { %v2318_v41 = vpop.f32.mrf.mxu0 }
 0x2c7   :  { %v403_v42 = vmax.f32 %v370_v40, 0.0 }
 0x2c8   :  { %v374_v43 = vpop.f32.mrf.mxu0 }
 0x2c9   :  { %v375_v44 = vadd.f32 %v374_v43, %v251_v36  ;;  %417 = vrot.lane.b32.xlu0 %v403_v42, %s2412_s16  ;;  %720 = vrot.lane.b32.xlu1 %v403_v42, %s2404_s23 }
 0x2ca   :  { %v2321_v45 = vpop.f32.mrf.mxu0 }
 0x2cb   :  { %v404_v47 = vmax.f32 %v375_v44, 0.0 }
 0x2cc   :  { %v379_v48 = vpop.f32.mrf.mxu0 }
 0x2cd   :  { %v380_v49 = vadd.f32 %v379_v48, %v256_v46  ;;  %419 = vrot.lane.b32.xlu1 %v404_v47, %s2412_s16  ;;  %722 = vrot.lane.b32.xlu0 %v404_v47, %s2404_s23 }
 0x2ce   :  { %v2324_v51 = vpop.f32.mrf.mxu0 }
 0x2cf   :  { %v405_v52 = vmax.f32 %v380_v49, 0.0 }
 0x2d0   :  { %v384_v53 = vpop.f32.mrf.mxu0 }
 0x2d1   :  { %v385_v54 = vadd.f32 %v384_v53, %v261_v50  ;;  %421 = vrot.lane.b32.xlu0 %v405_v52, %s2412_s16  ;;  %724 = vrot.lane.b32.xlu1 %v405_v52, %s2404_s23 }
 0x2d2   :  { %v2327_v55 = vpop.f32.mrf.mxu0 }
 0x2d3   :  { %v406_v56 = vmax.f32 %v385_v54, 0.0 }
 0x2d4   :  { %v389_v58 = vpop.f32.mrf.mxu0 }
 0x2d5   :  { %v390_v59 = vadd.f32 %v389_v58, %v266_v57  ;;  %423 = vrot.lane.b32.xlu0 %v406_v56, %s2412_s16  ;;  %726 = vrot.lane.b32.xlu1 %v406_v56, %s2404_s23 }
 0x2d6   :  { %v2330_v60 = vpop.f32.mrf.mxu0 }
 0x2d7   :  { %v407_v61 = vmax.f32 %v390_v59, 0.0 }
 0x2d8   :  { %v394_v62 = vpop.f32.mrf.mxu0 }
 0x2d9   :  { %v395_v63 = vadd.f32 %v394_v62, %v271_v39  ;;  %728 = vrot.lane.b32.xlu0 %v407_v61, %s2404_s23  ;;  %425 = vrot.lane.b32.xlu1 %v407_v61, %s2412_s16 }
 0x2da   :  { %v2333_v0 = vpop.f32.mrf.mxu0 }
 0x2db   :  { %v408_v1 = vmax.f32 %v395_v63, 0.0 }
 0x2dc   :  { %v399_v3 = vpop.f32.mrf.mxu0 }
 0x2dd   :  { %v400_v4 = vadd.f32 %v399_v3, %v276_v2  ;;  %427 = vrot.lane.b32.xlu0 %v408_v1, %s2412_s16  ;;  %730 = vrot.lane.b32.xlu1 %v408_v1, %s2404_s23 }
 0x2de   :  { %v2336_v5 = vpop.f32.mrf.mxu0 }
 0x2df   :  { %v409_v6 = vmax.f32 %v400_v4, 0.0 }
 0x2e1   :  { %732 = vrot.lane.b32.xlu0 %v409_v6, %s2404_s23  ;;  %429 = vrot.lane.b32.xlu1 %v409_v6, %s2412_s16 }
 0x33b   :  { %v721_v7 = vpop.permute.xlu1 %720  ;;  %v418_v8 = vpop.permute.xlu0 %417 }
 0x33c   :  { %v741_v9 = vsel %vm438_vm6, 0.0, %v721_v7  ;;  %v439_v11 = vsel %vm438_vm6, 0.0, %v418_v8 }
 0x33d   :  { %v2660_v10 = vsel %vm446_vm7, %v741_v9, 0.0  ;;  %v2672_v14 = vsel %vm446_vm7, %v439_v11, 0.0 }
 0x33e   :  { %910 = vrot.lane.b32.xlu0 %v2660_v10, %s2403_s22  ;;  %848 = vrot.lane.b32.xlu1 %v2660_v10, %s2393_s13  ;;  %4164 = vst [vmem:[#allocation3_spill] sm:$0xff] %v2672_v14  ;;  %v2681_v20 = vrot.slane %v2660_v10, 4  ;;  %v2684_v21 = vrot.slane %v2660_v10, 6  ;;  %v2697_v28 = vrot.slane %v2660_v10, 2  ;;  %v2747_v50 = vrot.slane %v2672_v14, 4 }
 0x33f   :  { %v2667_v12 = vpop.permute.xlu1 %419  ;;  %v2669_v13 = vpop.permute.xlu0 %722  ;;  %v531_v63 = vrot.slane %v2672_v14, 2 }
 0x342   :  { %649 = vrot.lane.b32.xlu0 %v2672_v14, %s2403_s22  ;;  %565 = vrot.lane.b32.xlu1 %v2672_v14, %s2393_s13 }
 0x343   :  { %v725_v16 = vpop.permute.xlu1 %724  ;;  %v422_v17 = vpop.permute.xlu0 %421 }
 0x344   :  { %v743_v18 = vsel %vm438_vm6, 0.0, %v725_v16  ;;  %v441_v19 = vsel %vm438_vm6, 0.0, %v422_v17  ;;  %v462_v16 = vrot.slane %v2672_v14, 6 }
 0x345   :  { %v2687_v22 = vsel %vm446_vm7, %v743_v18, 0.0  ;;  %v2690_v24 = vsel %vm446_vm7, %v441_v19, 0.0 }
 0x346   :  { %4165 = vst [vmem:[#allocation4_spill] sm:$0xff] %v2690_v24  ;;  %941 = vrot.lane.b32.xlu0 %v2681_v20, %s2402_s21  ;;  %863 = vrot.lane.b32.xlu1 %v2684_v21, %s2405_s24  ;;  %v823_v15 = vrot.slane %v2687_v22, 2  ;;  %v794_v23 = vrot.slane %v2687_v22, 4  ;;  %v765_v32 = vrot.slane %v2687_v22, 6 }
 0x347   :  { %v727_v26 = vpop.permute.xlu1 %726  ;;  %v424_v27 = vpop.permute.xlu0 %423 }
 0x348   :  { %v744_v29 = vsel %vm438_vm6, 0.0, %v727_v26  ;;  %v442_v30 = vsel %vm438_vm6, 0.0, %v424_v27  ;;  %v742_v26 = vsel %vm438_vm6, 0.0, %v2669_v13 }
 0x349   :  { %v2704_v31 = vsel %vm446_vm7, %v744_v29, 0.0  ;;  %v2707_v25 = vsel %vm446_vm7, %v442_v30, 0.0  ;;  %v2814_v27 = vsel %vm446_vm7, %v742_v26, 0.0  ;;  %v440_v29 = vsel %vm438_vm6, 0.0, %v2667_v12 }
 0x34a   :  { %4166 = vst [vmem:[#allocation5_spill] sm:$0xff] %v2707_v25  ;;  %804 = vrot.lane.b32.xlu0 %v2681_v20, %s2395_s0  ;;  %895 = vrot.lane.b32.xlu1 %v2697_v28, %s2407_s26  ;;  %v796_v33 = vrot.slane %v2704_v31, 4  ;;  %v825_v35 = vrot.slane %v2704_v31, 2  ;;  %v767_v38 = vrot.slane %v2704_v31, 6  ;;  %v2826_v13 = vsel %vm446_vm7, %v440_v29, 0.0 }
 0x34b   :  { %v426_v36 = vpop.permute.xlu1 %425  ;;  %v729_v37 = vpop.permute.xlu0 %728  ;;  %4170 = vst [vmem:[#allocation9_spill] sm:$0xff] %v2826_v13  ;;  %v821_v30 = vrot.slane %v2814_v27, 2 }
 0x34c   :  { %v443_v39 = vsel %vm438_vm6, 0.0, %v426_v36  ;;  %v745_v40 = vsel %vm438_vm6, 0.0, %v729_v37  ;;  %v2722_v41 = vsel %vm90_vm2, %v794_v23, %v796_v33  ;;  %v2727_v42 = vsel %vm530_vm8, %v823_v15, %v825_v35 }
 0x34d   :  { %v2730_v43 = vsel %vm446_vm7, %v443_v39, 0.0  ;;  %v2733_v44 = vsel %vm446_vm7, %v745_v40, 0.0  ;;  %v2738_v45 = vsel %vm461_vm9, %v765_v32, %v767_v38  ;;  %v822_v12 = vsel %vm530_vm8, %v2697_v28, %v821_v30 }
 0x34e   :  { %4167 = vst [vmem:[#allocation6_spill] sm:$0xff] %v2730_v43  ;;  %925 = vrot.lane.b32.xlu0 %v2684_v21, %s2406_s25  ;;  %879 = vrot.lane.b32.xlu1 %v2681_v20, %s2391_s11  ;;  %v827_v46 = vrot.slane %v2733_v44, 2  ;;  %v769_v47 = vrot.slane %v2733_v44, 6  ;;  %v798_v51 = vrot.slane %v2733_v44, 4  ;;  %v763_v36 = vrot.slane %v2814_v27, 6 }
 0x34f   :  { %v731_v48 = vpop.permute.xlu1 %730  ;;  %v428_v49 = vpop.permute.xlu0 %427  ;;  %v463_v39 = vrot.slane %v2826_v13, 6 }
 0x350   :  { %v746_v52 = vsel %vm438_vm6, 0.0, %v731_v48  ;;  %v444_v53 = vsel %vm438_vm6, 0.0, %v428_v49  ;;  %v2753_v54 = vsel %vm530_vm8, %v825_v35, %v827_v46  ;;  %v2756_v55 = vsel %vm461_vm9, %v767_v38, %v769_v47 }
 0x351   :  { %v2759_v56 = vsel %vm446_vm7, %v746_v52, 0.0  ;;  %v2762_v57 = vsel %vm446_vm7, %v444_v53, 0.0  ;;  %v2765_v58 = vsel %vm90_vm2, %v796_v33, %v798_v51  ;;  %v792_v33 = vrot.slane %v2814_v27, 4 }
 0x352   :  { %4168 = vst [vmem:[#allocation7_spill] sm:$0xff] %v2762_v57  ;;  %775 = vrot.lane.b32.xlu0 %v2684_v21, %s2396_s15  ;;  %691 = vrot.lane.b32.xlu1 %v2747_v50, %s2402_s21  ;;  %v771_v59 = vrot.slane %v2759_v56, 6  ;;  %v800_v60 = vrot.slane %v2759_v56, 4  ;;  %v829_v0 = vrot.slane %v2759_v56, 2  ;;  %v764_v37 = vsel %vm461_vm9, %v2684_v21, %v763_v36 }
 0x353   :  { %v430_v61 = vpop.permute.xlu1 %429  ;;  %v733_v62 = vpop.permute.xlu0 %732  ;;  %v793_v35 = vsel %vm90_vm2, %v2681_v20, %v792_v33  ;;  %v532_v20 = vrot.slane %v2826_v13, 2  ;;  %v2860_v40 = vsel %vm461_vm9, %v462_v16, %v463_v39  ;;  %v766_v48 = vsel %vm461_vm9, %v763_v36, %v765_v32 }
 0x354   :  { %v445_v1 = vsel %vm438_vm6, 0.0, %v430_v61  ;;  %v747_v2 = vsel %vm438_vm6, 0.0, %v733_v62  ;;  %v2778_v3 = vsel %vm461_vm9, %v769_v47, %v771_v59  ;;  %v2781_v4 = vsel %vm90_vm2, %v798_v51, %v800_v60 }
 0x355   :  { %v2784_v5 = vsel %vm446_vm7, %v445_v1, 0.0  ;;  %v2787_v6 = vsel %vm446_vm7, %v747_v2, 0.0  ;;  %v2790_v7 = vsel %vm530_vm8, %v827_v46, %v829_v0  ;;  %v533_v21 = vsel %vm530_vm8, %v531_v63, %v532_v20 }
 0x356   :  { %4169 = vst [vmem:[#allocation8_spill] sm:$0xff] %v2784_v5  ;;  %833 = vrot.lane.b32.xlu0 %v2697_v28, %s2394_s14  ;;  %628 = vrot.lane.b32.xlu1 %v531_v63, %s2407_s26  ;;  %v802_v8 = vrot.slane %v2787_v6, 4  ;;  %v831_v9 = vrot.slane %v2787_v6, 2  ;;  %v773_v11 = vrot.slane %v2787_v6, 6  ;;  %v497_v28 = vrot.slane %v2826_v13, 4 }
 0x357   :  { %v824_v46 = vsel %vm530_vm8, %v821_v30, %v823_v15  ;;  %v795_v47 = vsel %vm90_vm2, %v792_v33, %v794_v23  ;;  %v499_v15 = vrot.slane %v2690_v24, 4  ;;  %v465_v32 = vrot.slane %v2690_v24, 6 }
 0x358   :  { %v2800_v17 = vsel %vm90_vm2, %v800_v60, %v802_v8  ;;  %v2803_v18 = vsel %vm530_vm8, %v829_v0, %v831_v9  ;;  %v2806_v19 = vsel %vm461_vm9, %v771_v59, %v773_v11  ;;  %v498_v38 = vsel %vm90_vm2, %v2747_v50, %v497_v28 }
 0x359   :  { %v2896_v23 = vsel %vm90_vm2, %v497_v28, %v499_v15  ;;  %v501_v9 = vrot.slane %v2707_v25, 4 }
 0x35a   :  { %607 = vrot.lane.b32.xlu1 %v2747_v50, %s2391_s11  ;;  %586 = vrot.lane.b32.xlu0 %v462_v16, %s2405_s24 }
 0x35e   :  { %509 = vrot.lane.b32.xlu0 %v2747_v50, %s2395_s0  ;;  %850 = vrot.lane.b32.xlu1 %v2814_v27, %s2393_s13  ;;  %v466_v50 = vsel %vm461_vm9, %v463_v39, %v465_v32 }
 0x362   :  { %670 = vrot.lane.b32.xlu0 %v462_v16, %s2406_s25  ;;  %912 = vrot.lane.b32.xlu1 %v2814_v27, %s2403_s22 }
 0x366   :  { %475 = vrot.lane.b32.xlu0 %v462_v16, %s2396_s15  ;;  %567 = vrot.lane.b32.xlu1 %v2826_v13, %s2393_s13 }
 0x36a   :  { %544 = vrot.lane.b32.xlu0 %v531_v63, %s2394_s14  ;;  %651 = vrot.lane.b32.xlu1 %v2826_v13, %s2403_s22  ;;  %v538_v13 = vrot.slane %v2730_v43, 2 }
 0x36e   :  { %897 = vrot.lane.b32.xlu0 %v822_v12, %s2407_s26  ;;  %943 = vrot.lane.b32.xlu1 %v793_v35, %s2402_s21 }
 0x372   :  { %806 = vrot.lane.b32.xlu1 %v793_v35, %s2395_s0  ;;  %927 = vrot.lane.b32.xlu0 %v764_v37, %s2406_s25 }
 0x376   :  { %881 = vrot.lane.b32.xlu1 %v793_v35, %s2391_s11  ;;  %777 = vrot.lane.b32.xlu0 %v764_v37, %s2396_s15 }
 0x37a   :  { %835 = vrot.lane.b32.xlu1 %v822_v12, %s2394_s14  ;;  %865 = vrot.lane.b32.xlu0 %v764_v37, %s2405_s24  ;;  %v467_v12 = vrot.slane %v2707_v25, 6 }
 0x37e   :  { %693 = vrot.lane.b32.xlu1 %v498_v38, %s2402_s21  ;;  %630 = vrot.lane.b32.xlu0 %v533_v21, %s2407_s26 }
 0x382   :  { %511 = vrot.lane.b32.xlu1 %v498_v38, %s2395_s0  ;;  %672 = vrot.lane.b32.xlu0 %v2860_v40, %s2406_s25 }
 0x386   :  { %609 = vrot.lane.b32.xlu1 %v498_v38, %s2391_s11  ;;  %477 = vrot.lane.b32.xlu0 %v2860_v40, %s2396_s15 }
 0x38a   :  { %546 = vrot.lane.b32.xlu1 %v533_v21, %s2394_s14  ;;  %914 = vrot.lane.b32.xlu0 %v2687_v22, %s2403_s22 }
 0x38e   :  { %852 = vrot.lane.b32.xlu1 %v2687_v22, %s2393_s13  ;;  %653 = vrot.lane.b32.xlu0 %v2690_v24, %s2403_s22 }
 0x392   :  { %976 = vrot.lane.b32.xlu0 %v2687_v22, %s2408_s27  ;;  %569 = vrot.lane.b32.xlu1 %v2690_v24, %s2393_s13  ;;  %v534_v22 = vrot.slane %v2690_v24, 2 }
 0x394   :  { %v535_v49 = vsel %vm530_vm8, %v532_v20, %v534_v22 }
 0x396   :  { %899 = vrot.lane.b32.xlu0 %v824_v46, %s2407_s26  ;;  %808 = vrot.lane.b32.xlu1 %v795_v47, %s2395_s0 }
 0x39a   :  { %929 = vrot.lane.b32.xlu0 %v766_v48, %s2406_s25  ;;  %883 = vrot.lane.b32.xlu1 %v795_v47, %s2391_s11 }
 0x39e   :  { %779 = vrot.lane.b32.xlu0 %v766_v48, %s2396_s15  ;;  %867 = vrot.lane.b32.xlu1 %v766_v48, %s2405_s24 }
 0x3a2   :  { %837 = vrot.lane.b32.xlu0 %v824_v46, %s2394_s14  ;;  %513 = vrot.lane.b32.xlu1 %v2896_v23, %s2395_s0 }
 0x3a6   :  { %945 = vrot.lane.b32.xlu0 %v795_v47, %s2402_s21  ;;  %611 = vrot.lane.b32.xlu1 %v2896_v23, %s2391_s11 }
 0x3aa   :  { %632 = vrot.lane.b32.xlu0 %v535_v49, %s2407_s26  ;;  %590 = vrot.lane.b32.xlu1 %v466_v50, %s2405_s24 }
 0x3ae   :  { %854 = vrot.lane.b32.xlu1 %v2704_v31, %s2393_s13  ;;  %674 = vrot.lane.b32.xlu0 %v466_v50, %s2406_s25 }
 0x3b0   :  { %v2913_v51 = vpop.permute.xlu1 %848  ;;  %v2915_v52 = vpop.permute.xlu0 %910 }
 0x3b2   :  { %479 = vrot.lane.b32.xlu0 %v466_v50, %s2396_s15  ;;  %571 = vrot.lane.b32.xlu1 %v2707_v25, %s2393_s13 }
 0x3b4   :  { %v2920_v53 = vpop.permute.xlu1 %565  ;;  %v2922_v59 = vpop.permute.xlu0 %649 }
 0x3b5   :  { %4171 = vst [vmem:[#allocation10_spill] sm:$0xff] %v2920_v53  ;;  %4172 = vst [vmem:[#allocation11_spill] sm:$0xff] %v2922_v59 }
 0x3b6   :  { %548 = vrot.lane.b32.xlu0 %v535_v49, %s2394_s14  ;;  %810 = vrot.lane.b32.xlu1 %v2722_v41, %s2395_s0  ;;  %v469_v49 = vrot.slane %v2730_v43, 6 }
 0x3b8   :  { %v2927_v60 = vpop.permute.xlu1 %863  ;;  %v2929_v61 = vpop.permute.xlu0 %941 }
 0x3ba   :  { %916 = vrot.lane.b32.xlu0 %v2704_v31, %s2403_s22  ;;  %885 = vrot.lane.b32.xlu1 %v2722_v41, %s2391_s11 }
 0x3bc   :  { %v2935_v62 = vpop.permute.xlu1 %895  ;;  %v2937_v63 = vpop.permute.xlu0 %804 }
 0x3be   :  { %655 = vrot.lane.b32.xlu0 %v2707_v25, %s2403_s22  ;;  %839 = vrot.lane.b32.xlu1 %v2727_v42, %s2394_s14 }
 0x3c0   :  { %v2943_v0 = vpop.permute.xlu1 %879  ;;  %v2945_v1 = vpop.permute.xlu0 %925 }
 0x3c2   :  { %978 = vrot.lane.b32.xlu0 %v2704_v31, %s2408_s27  ;;  %869 = vrot.lane.b32.xlu1 %v2738_v45, %s2405_s24  ;;  %v2965_v31 = vsel %vm90_vm2, %v499_v15, %v501_v9 }
 0x3c4   :  { %v2951_v2 = vpop.permute.xlu1 %691  ;;  %v2953_v8 = vpop.permute.xlu0 %775 }
 0x3c6   :  { %901 = vrot.lane.b32.xlu0 %v2727_v42, %s2407_s26  ;;  %947 = vrot.lane.b32.xlu1 %v2722_v41, %s2402_s21  ;;  %v536_v42 = vrot.slane %v2707_v25, 2 }
 0x3c8   :  { %v2960_v11 = vpop.permute.xlu1 %628  ;;  %v2962_v16 = vpop.permute.xlu0 %833  ;;  %v537_v33 = vsel %vm530_vm8, %v534_v22, %v536_v42  ;;  %v539_v24 = vsel %vm530_vm8, %v536_v42, %v538_v13 }
 0x3c9   :  { %4173 = vst [vmem:[#allocation12_spill] sm:$0xff] %v2960_v11 }
 0x3ca   :  { %931 = vrot.lane.b32.xlu0 %v2738_v45, %s2406_s25  ;;  %515 = vrot.lane.b32.xlu1 %v2965_v31, %s2395_s0 }
 0x3cc   :  { %v2971_v26 = vpop.permute.xlu1 %607  ;;  %v2973_v29 = vpop.permute.xlu0 %586 }
 0x3cd   :  { %4174 = vst [vmem:[#allocation13_spill] sm:$0xff] %v2971_v26  ;;  %v505_v26 = vrot.slane %v2762_v57, 4 }
 0x3ce   :  { %781 = vrot.lane.b32.xlu0 %v2738_v45, %s2396_s15  ;;  %613 = vrot.lane.b32.xlu1 %v2965_v31, %s2391_s11  ;;  %v468_v45 = vsel %vm461_vm9, %v465_v32, %v467_v12 }
 0x3d0   :  { %v2980_v41 = vpop.permute.xlu1 %850  ;;  %v2982_v30 = vpop.permute.xlu0 %509 }
 0x3d1   :  { %4175 = vst [vmem:[#allocation14_spill] sm:$0xff] %v2982_v30 }
 0x3d2   :  { %634 = vrot.lane.b32.xlu0 %v537_v33, %s2407_s26  ;;  %550 = vrot.lane.b32.xlu1 %v537_v33, %s2394_s14 }
 0x3d4   :  { %v2988_v35 = vpop.permute.xlu1 %912  ;;  %v2990_v36 = vpop.permute.xlu0 %670 }
 0x3d5   :  { %4176 = vst [vmem:[#allocation15_spill] sm:$0xff] %v2990_v36  ;;  %v540_v36 = vrot.slane %v2762_v57, 2 }
 0x3d6   :  { %592 = vrot.lane.b32.xlu1 %v468_v45, %s2405_s24  ;;  %676 = vrot.lane.b32.xlu0 %v468_v45, %s2406_s25 }
 0x3d7   :  { %v541_v53 = vsel %vm530_vm8, %v538_v13, %v540_v36 }
 0x3d8   :  { %v2995_v37 = vpop.permute.xlu1 %567  ;;  %v2997_v28 = vpop.permute.xlu0 %475 }
 0x3d9   :  { %4177 = vst [vmem:[#allocation16_spill] sm:$0xff] %v2995_v37  ;;  %4178 = vst [vmem:[#allocation17_spill] sm:$0xff] %v2997_v28 }
 0x3da   :  { %481 = vrot.lane.b32.xlu0 %v468_v45, %s2396_s15  ;;  %856 = vrot.lane.b32.xlu1 %v2733_v44, %s2393_s13  ;;  %v503_v45 = vrot.slane %v2730_v43, 4 }
 0x3dc   :  { %v3002_v20 = vpop.permute.xlu1 %651  ;;  %v3004_v38 = vpop.permute.xlu0 %544 }
 0x3dd   :  { %4179 = vst [vmem:[#allocation18_spill] sm:$0xff] %v3002_v20  ;;  %4180 = vst [vmem:[#allocation19_spill] sm:$0xff] %v3004_v38 }
 0x3de   :  { %918 = vrot.lane.b32.xlu1 %v2733_v44, %s2403_s22  ;;  %903 = vrot.lane.b32.xlu0 %v2753_v54, %s2407_s26 }
 0x3e0   :  { %v3010_v21 = vpop.permute.xlu1 %943  ;;  %v3012_v39 = vpop.permute.xlu0 %897 }
 0x3e2   :  { %573 = vrot.lane.b32.xlu1 %v2730_v43, %s2393_s13  ;;  %933 = vrot.lane.b32.xlu0 %v2756_v55, %s2406_s25 }
 0x3e4   :  { %v3018_v46 = vpop.permute.xlu1 %806  ;;  %v3020_v47 = vpop.permute.xlu0 %927 }
 0x3e6   :  { %657 = vrot.lane.b32.xlu1 %v2730_v43, %s2403_s22  ;;  %887 = vrot.lane.b32.xlu0 %v2765_v58, %s2391_s11 }
 0x3e8   :  { %v3026_v48 = vpop.permute.xlu1 %881  ;;  %v3028_v15 = vpop.permute.xlu0 %777 }
 0x3ea   :  { %980 = vrot.lane.b32.xlu1 %v2733_v44, %s2408_s27  ;;  %871 = vrot.lane.b32.xlu0 %v2756_v55, %s2405_s24  ;;  %v470_v44 = vsel %vm461_vm9, %v467_v12, %v469_v49 }
 0x3ec   :  { %v3034_v22 = vpop.permute.xlu1 %835  ;;  %v3036_v32 = vpop.permute.xlu0 %865 }
 0x3ee   :  { %783 = vrot.lane.b32.xlu1 %v2756_v55, %s2396_s15  ;;  %949 = vrot.lane.b32.xlu0 %v2765_v58, %s2402_s21  ;;  %v3057_v55 = vsel %vm90_vm2, %v501_v9, %v503_v45 }
 0x3f0   :  { %v3043_v50 = vpop.permute.xlu1 %693  ;;  %v3045_v33 = vpop.permute.xlu0 %630 }
 0x3f1   :  { %4181 = vst [vmem:[#allocation20_spill] sm:$0xff] %v3045_v33 }
 0x3f2   :  { %841 = vrot.lane.b32.xlu1 %v2753_v54, %s2394_s14  ;;  %678 = vrot.lane.b32.xlu0 %v470_v44, %s2406_s25 }
 0x3f4   :  { %v3052_v34 = vpop.permute.xlu1 %511  ;;  %v3054_v14 = vpop.permute.xlu0 %672 }
 0x3f5   :  { %4182 = vst [vmem:[#allocation21_spill] sm:$0xff] %v3052_v34  ;;  %4183 = vst [vmem:[#allocation22_spill] sm:$0xff] %v3054_v14 }
 0x3f6   :  { %812 = vrot.lane.b32.xlu1 %v2765_v58, %s2395_s0  ;;  %615 = vrot.lane.b32.xlu0 %v3057_v55, %s2391_s11 }
 0x3f8   :  { %v3064_v12 = vpop.permute.xlu1 %609  ;;  %v3066_v54 = vpop.permute.xlu0 %477 }
 0x3f9   :  { %4184 = vst [vmem:[#allocation23_spill] sm:$0xff] %v3064_v12  ;;  %4185 = vst [vmem:[#allocation24_spill] sm:$0xff] %v3066_v54  ;;  %v3124_v54 = vsel %vm90_vm2, %v503_v45, %v505_v26 }
 0x3fa   :  { %636 = vrot.lane.b32.xlu1 %v539_v24, %s2407_s26  ;;  %594 = vrot.lane.b32.xlu0 %v470_v44, %s2405_s24 }
 0x3fc   :  { %v3071_v9 = vpop.permute.xlu1 %546  ;;  %v3073_v59 = vpop.permute.xlu0 %914 }
 0x3fd   :  { %4186 = vst [vmem:[#allocation25_spill] sm:$0xff] %v3071_v9 }
 0x3fe   :  { %483 = vrot.lane.b32.xlu1 %v470_v44, %s2396_s15  ;;  %982 = vrot.lane.b32.xlu0 %v2759_v56, %s2408_s27 }
 0x400   :  { %v3078_v58 = vpop.permute.xlu1 %852  ;;  %v3080_v38 = vpop.permute.xlu0 %653 }
 0x401   :  { %4187 = vst [vmem:[#allocation26_spill] sm:$0xff] %v3080_v38 }
 0x402   :  { %552 = vrot.lane.b32.xlu1 %v539_v24, %s2394_s14  ;;  %935 = vrot.lane.b32.xlu0 %v2778_v3, %s2406_s25 }
 0x404   :  { %v3085_v42 = vpop.permute.xlu1 %569  ;;  %v3087_v20 = vpop.permute.xlu0 %976 }
 0x405   :  { %4188 = vst [vmem:[#allocation27_spill] sm:$0xff] %v3085_v42  ;;  %4189 = vst [vmem:[#allocation28_spill] sm:$0xff] %v3087_v20  ;;  %v471_v20 = vrot.slane %v2762_v57, 6  ;;  %v473_v42 = vrot.slane %v2784_v5, 6 }
 0x406   :  { %858 = vrot.lane.b32.xlu1 %v2759_v56, %s2393_s13  ;;  %889 = vrot.lane.b32.xlu0 %v2781_v4, %s2391_s11 }
 0x407   :  { %v474_v33 = vsel %vm461_vm9, %v471_v20, %v473_v42 }
 0x408   :  { %v3093_v44 = vpop.permute.xlu1 %808  ;;  %v3095_v25 = vpop.permute.xlu0 %899 }
 0x40a   :  { %920 = vrot.lane.b32.xlu1 %v2759_v56, %s2403_s22  ;;  %843 = vrot.lane.b32.xlu0 %v2790_v7, %s2394_s14  ;;  %v472_v56 = vsel %vm461_vm9, %v469_v49, %v471_v20 }
 0x40c   :  { %v3101_v24 = vpop.permute.xlu1 %883  ;;  %v3103_v9 = vpop.permute.xlu0 %929 }
 0x40e   :  { %575 = vrot.lane.b32.xlu1 %v2762_v57, %s2393_s13  ;;  %814 = vrot.lane.b32.xlu0 %v2781_v4, %s2395_s0 }
 0x410   :  { %v3110_v38 = vpop.permute.xlu1 %867  ;;  %v3112_v43 = vpop.permute.xlu0 %779 }
 0x412   :  { %659 = vrot.lane.b32.xlu1 %v2762_v57, %s2403_s22  ;;  %680 = vrot.lane.b32.xlu0 %v472_v56, %s2406_s25 }
 0x414   :  { %v3119_v12 = vpop.permute.xlu1 %513  ;;  %v3121_v28 = vpop.permute.xlu0 %837 }
 0x416   :  { %785 = vrot.lane.b32.xlu1 %v2778_v3, %s2396_s15  ;;  %617 = vrot.lane.b32.xlu0 %v3124_v54, %s2391_s11 }
 0x418   :  { %v3131_v49 = vpop.permute.xlu1 %611  ;;  %v3133_v14 = vpop.permute.xlu0 %945 }
 0x419   :  { %4190 = vst [vmem:[#allocation29_spill] sm:$0xff] %v3131_v49 }
 0x41a   :  { %873 = vrot.lane.b32.xlu1 %v2778_v3, %s2405_s24  ;;  %554 = vrot.lane.b32.xlu0 %v541_v53, %s2394_s14 }
 0x41c   :  { %v3139_v45 = vpop.permute.xlu1 %590  ;;  %v3141_v57 = vpop.permute.xlu0 %632 }
 0x41d   :  { %4191 = vst [vmem:[#allocation30_spill] sm:$0xff] %v3139_v45  ;;  %4192 = vst [vmem:[#allocation31_spill] sm:$0xff] %v3141_v57 }
 0x41e   :  { %905 = vrot.lane.b32.xlu1 %v2790_v7, %s2407_s26  ;;  %519 = vrot.lane.b32.xlu0 %v3124_v54, %s2395_s0 }
 0x420   :  { %v3147_v49 = vpop.permute.xlu1 %854  ;;  %v3149_v37 = vpop.permute.xlu0 %674 }
 0x421   :  { %4193 = vst [vmem:[#allocation32_spill] sm:$0xff] %v3149_v37 }
 0x422   :  { %951 = vrot.lane.b32.xlu1 %v2781_v4, %s2402_s21  ;;  %860 = vrot.lane.b32.xlu0 %v2787_v6, %s2393_s13 }
 0x424   :  { %v3155_v3 = vpop.permute.xlu1 %571  ;;  %v3157_v13 = vpop.permute.xlu0 %479 }
 0x425   :  { %4194 = vst [vmem:[#allocation33_spill] sm:$0xff] %v3155_v3  ;;  %4195 = vst [vmem:[#allocation34_spill] sm:$0xff] %v3157_v13  ;;  %v542_v3 = vrot.slane %v2784_v5, 2 }
 0x426   :  { %485 = vrot.lane.b32.xlu1 %v472_v56, %s2396_s15  ;;  %891 = vrot.lane.b32.xlu0 %v2800_v17, %s2391_s11 }
 0x427   :  { %v543_v34 = vsel %vm530_vm8, %v540_v36, %v542_v3 }
 0x428   :  { %v3162_v7 = vpop.permute.xlu1 %810  ;;  %v3164_v45 = vpop.permute.xlu0 %548 }
 0x429   :  { %4196 = vst [vmem:[#allocation35_spill] sm:$0xff] %v3164_v45 }
 0x42a   :  { %596 = vrot.lane.b32.xlu1 %v472_v56, %s2405_s24  ;;  %845 = vrot.lane.b32.xlu0 %v2803_v18, %s2394_s14 }
 0x42c   :  { %v3169_v4 = vpop.permute.xlu1 %885  ;;  %v3171_v37 = vpop.permute.xlu0 %916 }
 0x42e   :  { %638 = vrot.lane.b32.xlu1 %v541_v53, %s2407_s26  ;;  %875 = vrot.lane.b32.xlu0 %v2806_v19, %s2405_s24 }
 0x430   :  { %v3176_v13 = vpop.permute.xlu1 %839  ;;  %v3178_v11 = vpop.permute.xlu0 %655 }
 0x431   :  { %4197 = vst [vmem:[#allocation36_spill] sm:$0xff] %v3178_v11 }
 0x432   :  { %922 = vrot.lane.b32.xlu1 %v2787_v6, %s2403_s22  ;;  %907 = vrot.lane.b32.xlu0 %v2803_v18, %s2407_s26  ;;  %v507_v18 = vrot.slane %v2784_v5, 4 }
 0x434   :  { %v3184_v56 = vpop.permute.xlu1 %869  ;;  %v3186_v45 = vpop.permute.xlu0 %978  ;;  %v3207_v30 = vsel %vm90_vm2, %v505_v26, %v507_v18 }
 0x435   :  { %4198 = vst [vmem:[#allocation37_spill] sm:$0xff] %v3186_v45 }
 0x436   :  { %577 = vrot.lane.b32.xlu1 %v2784_v5, %s2393_s13  ;;  %953 = vrot.lane.b32.xlu0 %v2800_v17, %s2402_s21 }
 0x438   :  { %v3193_v53 = vpop.permute.xlu1 %947  ;;  %v3195_v11 = vpop.permute.xlu0 %901 }
 0x43a   :  { %661 = vrot.lane.b32.xlu1 %v2784_v5, %s2403_s22  ;;  %682 = vrot.lane.b32.xlu0 %v474_v33, %s2406_s25 }
 0x43c   :  { %v3202_v45 = vpop.permute.xlu1 %515  ;;  %v3204_v57 = vpop.permute.xlu0 %931 }
 0x43e   :  { %937 = vrot.lane.b32.xlu1 %v2806_v19, %s2406_s25  ;;  %619 = vrot.lane.b32.xlu0 %v3207_v30, %s2391_s11 }
 0x440   :  { %v3214_v20 = vpop.permute.xlu1 %613  ;;  %v3216_v42 = vpop.permute.xlu0 %781 }
 0x441   :  { %4199 = vst [vmem:[#allocation38_spill] sm:$0xff] %v3214_v20 }
 0x442   :  { %787 = vrot.lane.b32.xlu1 %v2806_v19, %s2396_s15  ;;  %556 = vrot.lane.b32.xlu0 %v543_v34, %s2394_s14 }
 0x444   :  { %v3222_v26 = vpop.permute.xlu1 %550  ;;  %v3224_v18 = vpop.permute.xlu0 %634 }
 0x445   :  { %4200 = vst [vmem:[#allocation39_spill] sm:$0xff] %v3222_v26 }
 0x446   :  { %816 = vrot.lane.b32.xlu1 %v2800_v17, %s2395_s0  ;;  %598 = vrot.lane.b32.xlu0 %v474_v33, %s2405_s24 }
 0x448   :  { %v3229_v5 = vpop.permute.xlu1 %592  ;;  %v3231_v20 = vpop.permute.xlu0 %676 }
 0x449   :  { %4201 = vst [vmem:[#allocation40_spill] sm:$0xff] %v3229_v5  ;;  %v956_v5 = vsel %vm461_vm9, %v2787_v6, %v2953_v8 }
 0x44a   :  { %487 = vrot.lane.b32.xlu1 %v474_v33, %s2396_s15  ;;  %640 = vrot.lane.b32.xlu0 %v543_v34, %s2407_s26 }
 0x44c   :  { %v3235_v19 = vpop.permute.xlu1 %856  ;;  %v3237_v36 = vpop.permute.xlu0 %481 }
 0x44e   :  { %521 = vrot.lane.b32.xlu1 %v3207_v30, %s2395_s0  ;;  %1022 = vrot.lane.b32.xlu0 %v2913_v51, %s2408_s27 }
 0x450   :  { %v3243_v17 = vpop.permute.xlu1 %918  ;;  %v904_v3 = vpop.permute.xlu0 %903 }
 0x452   :  { %984 = vrot.lane.b32.xlu1 %v956_v5, %s2408_s27  ;;  %1072 = vrot.lane.b32.xlu0 %v2915_v52, %s2408_s27 }
 0x454   :  { %v3251_v34 = vpop.permute.xlu1 %573  ;;  %v934_v33 = vpop.permute.xlu0 %933 }
 0x456   :  { %1024 = vrot.lane.b32.xlu1 %v2980_v41, %s2408_s27  ;;  %1098 = vrot.lane.b32.xlu0 %v3010_v21, %s2408_s27 }
 0x458   :  { %v3257_v51 = vpop.permute.xlu1 %657  ;;  %v888_v26 = vpop.permute.xlu0 %887 }
 0x459   :  { %4202 = vst [vmem:[#allocation41_spill] sm:$0xff] %v3257_v51 }
 0x45a   :  { %1074 = vrot.lane.b32.xlu1 %v2988_v35, %s2408_s27  ;;  %1060 = vrot.lane.b32.xlu0 %v3012_v39, %s2408_s27 }
 0x45c   :  { %v3263_v5 = vpop.permute.xlu1 %980  ;;  %v872_v6 = vpop.permute.xlu0 %871 }
 0x45d   :  { %4203 = vst [vmem:[#allocation42_spill] sm:$0xff] %v3263_v5 }
 0x45e   :  { %998 = vrot.lane.b32.xlu1 %v3018_v46, %s2408_s27  ;;  %1086 = vrot.lane.b32.xlu0 %v3020_v47, %s2408_s27 }
 0x460   :  { %v784_v52 = vpop.permute.xlu1 %783  ;;  %v3269_v8 = vpop.permute.xlu0 %949 }
 0x462   :  { %1048 = vrot.lane.b32.xlu1 %v3026_v48, %s2408_s27  ;;  %986 = vrot.lane.b32.xlu0 %v3028_v15, %s2408_s27 }
 0x464   :  { %v842_v41 = vpop.permute.xlu1 %841  ;;  %v3275_v35 = vpop.permute.xlu0 %678 }
 0x466   :  { %1010 = vrot.lane.b32.xlu1 %v3034_v22, %s2408_s27  ;;  %1076 = vrot.lane.b32.xlu0 %v3073_v59, %s2408_s27 }
 0x468   :  { %v3281_v21 = vpop.permute.xlu1 %812  ;;  %v3283_v39 = vpop.permute.xlu0 %615 }
 0x46a   :  { %1026 = vrot.lane.b32.xlu1 %v3078_v58, %s2408_s27  ;;  %1062 = vrot.lane.b32.xlu0 %v3095_v25, %s2408_s27 }
 0x46c   :  { %v3289_v46 = vpop.permute.xlu1 %636  ;;  %v3291_v47 = vpop.permute.xlu0 %594 }
 0x46d   :  { %4204 = vst [vmem:[#allocation43_spill] sm:$0xff] %v3291_v47 }
 0x46e   :  { %1000 = vrot.lane.b32.xlu1 %v3093_v44, %s2408_s27  ;;  %1088 = vrot.lane.b32.xlu0 %v3103_v9, %s2408_s27 }
 0x470   :  { %v3297_v59 = vpop.permute.xlu1 %483  ;;  %v3299_v48 = vpop.permute.xlu0 %982 }
 0x471   :  { %4205 = vst [vmem:[#allocation44_spill] sm:$0xff] %v3299_v48 }
 0x472   :  { %1050 = vrot.lane.b32.xlu1 %v3101_v24, %s2408_s27  ;;  %988 = vrot.lane.b32.xlu0 %v3112_v43, %s2408_s27 }
 0x474   :  { %v3305_v25 = vpop.permute.xlu1 %552  ;;  %v936_v15 = vpop.permute.xlu0 %935 }
 0x476   :  { %1038 = vrot.lane.b32.xlu1 %v3110_v38, %s2408_s27  ;;  %1012 = vrot.lane.b32.xlu0 %v3121_v28, %s2408_s27 }
 0x478   :  { %v859_v22 = vpop.permute.xlu1 %858  ;;  %v890_v9 = vpop.permute.xlu0 %889 }
 0x47a   :  { %1028 = vrot.lane.b32.xlu1 %v3147_v49, %s2408_s27  ;;  %1078 = vrot.lane.b32.xlu0 %v3171_v37, %s2408_s27 }
 0x47c   :  { %v921_v58 = vpop.permute.xlu1 %920  ;;  %v844_v44 = vpop.permute.xlu0 %843 }
 0x47e   :  { %1002 = vrot.lane.b32.xlu1 %v3162_v7, %s2408_s27  ;;  %1064 = vrot.lane.b32.xlu0 %v3195_v11, %s2408_s27 }
 0x480   :  { %v3319_v43 = vpop.permute.xlu1 %575  ;;  %v815_v38 = vpop.permute.xlu0 %814 }
 0x482   :  { %1052 = vrot.lane.b32.xlu1 %v3169_v4, %s2408_s27  ;;  %1090 = vrot.lane.b32.xlu0 %v3204_v57, %s2408_s27 }
 0x484   :  { %v3325_v28 = vpop.permute.xlu1 %659  ;;  %v3327_v37 = vpop.permute.xlu0 %680 }
 0x486   :  { %1014 = vrot.lane.b32.xlu1 %v3176_v13, %s2408_s27  ;;  %990 = vrot.lane.b32.xlu0 %v3216_v42, %s2408_s27 }
 0x488   :  { %v786_v11 = vpop.permute.xlu1 %785  ;;  %v3333_v24 = vpop.permute.xlu0 %617 }
 0x48a   :  { %1040 = vrot.lane.b32.xlu1 %v3184_v56, %s2408_s27  ;;  %1066 = vrot.lane.b32.xlu0 %v904_v3, %s2408_s27 }
 0x48c   :  { %v874_v49 = vpop.permute.xlu1 %873  ;;  %v3338_v57 = vpop.permute.xlu0 %554 }
 0x48e   :  { %1030 = vrot.lane.b32.xlu1 %v3235_v19, %s2408_s27  ;;  %1092 = vrot.lane.b32.xlu0 %v934_v33, %s2408_s27 }
 0x490   :  { %v906_v13 = vpop.permute.xlu1 %905  ;;  %v3343_v7 = vpop.permute.xlu0 %519 }
 0x491   :  { %4206 = vst [vmem:[#allocation45_spill] sm:$0xff] %v3343_v7 }
 0x492   :  { %1080 = vrot.lane.b32.xlu1 %v3243_v17, %s2408_s27  ;;  %1054 = vrot.lane.b32.xlu0 %v888_v26, %s2408_s27 }
 0x494   :  { %v3348_v4 = vpop.permute.xlu1 %951  ;;  %v861_v56 = vpop.permute.xlu0 %860 }
 0x496   :  { %992 = vrot.lane.b32.xlu1 %v784_v52, %s2408_s27  ;;  %1042 = vrot.lane.b32.xlu0 %v872_v6, %s2408_s27 }
 0x498   :  { %v3352_v42 = vpop.permute.xlu1 %485  ;;  %v892_v19 = vpop.permute.xlu0 %891 }
 0x49a   :  { %1016 = vrot.lane.b32.xlu1 %v842_v41, %s2408_s27  ;;  %1094 = vrot.lane.b32.xlu0 %v936_v15, %s2408_s27 }
 0x49c   :  { %v3356_v3 = vpop.permute.xlu1 %596  ;;  %v846_v33 = vpop.permute.xlu0 %845 }
 0x49d   :  { %4207 = vst [vmem:[#allocation46_spill] sm:$0xff] %v3356_v3 }
 0x49e   :  { %1032 = vrot.lane.b32.xlu1 %v859_v22, %s2408_s27  ;;  %1056 = vrot.lane.b32.xlu0 %v890_v9, %s2408_s27 }
 0x4a0   :  { %v3360_v26 = vpop.permute.xlu1 %638  ;;  %v876_v17 = vpop.permute.xlu0 %875 }
 0x4a1   :  { %4208 = vst [vmem:[#allocation47_spill] sm:$0xff] %v3360_v26 }
 0x4a2   :  { %1082 = vrot.lane.b32.xlu1 %v921_v58, %s2408_s27  ;;  %1018 = vrot.lane.b32.xlu0 %v844_v44, %s2408_s27  ;;  %v959_v58 = vsel %vm461_vm9, %v861_v56, %v2927_v60  ;;  %v961_v60 = vsel %vm530_vm8, %v892_v19, %v2935_v62  ;;  %v960_v19 = vsel %vm90_vm2, %v876_v17, %v2943_v0 }
 0x4a4   :  { %v923_v6 = vpop.permute.xlu1 %922  ;;  %v908_v52 = vpop.permute.xlu0 %907 }
 0x4a6   :  { %994 = vrot.lane.b32.xlu1 %v786_v11, %s2408_s27  ;;  %1020 = vrot.lane.b32.xlu0 %v846_v33, %s2408_s27  ;;  %v962_v33 = vsel %vm461_vm9, %v923_v6, %v2945_v1 }
 0x4a8   :  { %v3366_v41 = vpop.permute.xlu1 %577  ;;  %v954_v15 = vpop.permute.xlu0 %953 }
 0x4aa   :  { %1044 = vrot.lane.b32.xlu1 %v874_v49, %s2408_s27  ;;  %1070 = vrot.lane.b32.xlu0 %v908_v52, %s2408_s27 }
 0x4ac   :  { %v3370_v22 = vpop.permute.xlu1 %661  ;;  %v3372_v9 = vpop.permute.xlu0 %682 }
 0x4ae   :  { %1034 = vrot.lane.b32.xlu1 %v959_v58, %s2408_s27 }
 0x4b0   :  { %v938_v44 = vpop.permute.xlu1 %937  ;;  %v3377_v11 = vpop.permute.xlu0 %619 }
 0x4b1   :  { %v963_v49 = vsel %vm90_vm2, %v938_v44, %v2929_v61 }
 0x4b2   :  { %1084 = vrot.lane.b32.xlu1 %v962_v33, %s2408_s27  ;;  %1096 = vrot.lane.b32.xlu0 %v963_v49, %s2408_s27 }
 0x4b4   :  { %v788_v52 = vpop.permute.xlu1 %787  ;;  %v3385_v26 = vpop.permute.xlu0 %556 }
 0x4b5   :  { %v957_v56 = vsel %vm90_vm2, %v788_v52, %v2937_v63 }
 0x4b6   :  { %996 = vrot.lane.b32.xlu1 %v957_v56, %s2408_s27  ;;  %1058 = vrot.lane.b32.xlu0 %v961_v60, %s2408_s27 }
 0x4b8   :  { %v817_v1 = vpop.permute.xlu1 %816  ;;  %v3393_v6 = vpop.permute.xlu0 %598 }
 0x4b9   :  { %4209 = vst [vmem:[#allocation48_spill] sm:$0xff] %v3393_v6  ;;  %v958_v44 = vsel %vm530_vm8, %v817_v1, %v2962_v16 }
 0x4ba   :  { %1068 = vrot.lane.b32.xlu1 %v906_v13, %s2408_s27  ;;  %1006 = vrot.lane.b32.xlu0 %v815_v38, %s2408_s27 }
 0x4bc   :  { %v3397_v61 = vpop.permute.xlu1 %487  ;;  %v3399_v58 = vpop.permute.xlu0 %640 }
 0x4bd   :  { %4210 = vst [vmem:[#allocation49_spill] sm:$0xff] %v3399_v58 }
 0x4be   :  { %974 = vrot.lane.b32.xlu1 %v2814_v27, %s2408_s27  ;;  %588 = vrot.lane.b32.xlu0 %v2860_v40, %s2405_s24  ;;  %v1249_v27 = vld [vmem:[%s4146_s3 + $0x8] sm:$0xff]  ;;  %v1251_v40 = vld [vmem:[%s4146_s3 + $0x18] sm:$0xff] }
 0x4bf   :  { %1372 = vmatprep.mubr.f32.mxu1 %v1249_v27  ;;  %1457 = vmatprep.mubr.f32.mxu0 %v1251_v40 }
 0x4c0   :  { %v3405_v62 = vpop.permute.xlu1 %521  ;;  %v3407_v63 = vpop.permute.xlu0 %1022 }
 0x4c1   :  { %4211 = vst [vmem:[#allocation50_spill] sm:$0xff] %v3405_v62 }
 0x4c2   :  { %517 = vrot.lane.b32.xlu1 %v3057_v55, %s2395_s0  ;;  %1046 = vrot.lane.b32.xlu0 %v960_v19, %s2408_s27 }
 0x4c4   :  { %v3414_v38 = vpop.permute.xlu1 %984  ;;  %v3416_v13 = vpop.permute.xlu0 %1072 }
 0x4c5   :  { %4212 = vst [vmem:[#allocation51_spill] sm:$0xff] %v3416_v13 }
 0x4c6   :  { %972 = vrot.lane.b32.xlu1 %v2660_v10, %s2408_s27  ;;  %1036 = vrot.lane.b32.xlu0 %v3036_v32, %s2408_s27 }
 0x4c8   :  { %v3428_v0 = vpop.permute.xlu1 %1024  ;;  %v1099_v17 = vpop.permute.xlu0 %1098 }
 0x4c9   :  { %v1242_v33 = vsel %vm217_vm4, %v3043_v50, %v1099_v17 }
 0x4ca   :  { %1008 = vrot.lane.b32.xlu1 %v958_v44, %s2408_s27  ;;  %1004 = vrot.lane.b32.xlu0 %v3281_v21, %s2408_s27 }
 0x4cb   :  { %2237 = vmatprep.subr.mxu0 %v1242_v33 }
 0x4cc   :  { %v3437_v49 = vpop.permute.xlu1 %1074  ;;  %v3439_v10 = vpop.permute.xlu0 %1060 }
 0x4cd   :  { %4213 = vst [vmem:[#allocation52_spill] sm:$0xff] %v3437_v49 }
 0x4ce   :  { %703 = vrot.lane.b32.xlu0 %v3207_v30, %s2402_s21  ;;  %1108 = vrot.lane.b32.xlu1 %v954_v15, %s2408_s27 }
 0x4d0   :  { %v3444_v32 = vpop.permute.xlu1 %998  ;;  %v3446_v16 = vpop.permute.xlu0 %1086 }
 0x4d2   :  { %701 = vrot.lane.b32.xlu0 %v3124_v54, %s2402_s21  ;;  %1106 = vrot.lane.b32.xlu1 %v3348_v4, %s2408_s27 }
 0x4d4   :  { %v3452_v50 = vpop.permute.xlu1 %1048  ;;  %v3454_v21 = vpop.permute.xlu0 %986 }
 0x4d5   :  { %4214 = vst [vmem:[#allocation53_spill] sm:$0xff] %v3452_v50 }
 0x4d6   :  { %699 = vrot.lane.b32.xlu0 %v3057_v55, %s2402_s21  ;;  %1104 = vrot.lane.b32.xlu1 %v3269_v8, %s2408_s27  ;;  %v1270_v55 = vld [vmem:[%s4147_s4 + $0x10] sm:$0xff] }
 0x4d8   :  { %v3460_v30 = vpop.permute.xlu1 %1010  ;;  %v3462_v15 = vpop.permute.xlu0 %1076 }
 0x4d9   :  { %4215 = vst [vmem:[#allocation54_spill] sm:$0xff] %v3460_v30  ;;  %4216 = vst [vmem:[#allocation55_spill] sm:$0xff] %v3462_v15 }
 0x4da   :  { %697 = vrot.lane.b32.xlu0 %v2965_v31, %s2402_s21  ;;  %1102 = vrot.lane.b32.xlu1 %v3193_v53, %s2408_s27  ;;  %v1271_v31 = vld [vmem:[%s4147_s4 + $0x18] sm:$0x3f] }
 0x4dc   :  { %v3468_v54 = vpop.permute.xlu1 %1026  ;;  %v3470_v4 = vpop.permute.xlu0 %1062 }
 0x4de   :  { %695 = vrot.lane.b32.xlu0 %v2896_v23, %s2402_s21  ;;  %1100 = vrot.lane.b32.xlu1 %v3133_v14, %s2408_s27  ;;  %v1268_v23 = vld [vmem:[%s4147_s4] sm:$0xff]  ;;  %v1269_v14 = vld [vmem:[%s4147_s4 + $0x8] sm:$0xff]  ;;  %s2413_s4 = smov 3  }
 0x4e0   :  { %v1001_v8 = vpop.permute.xlu1 %1000  ;;  %v3482_v53 = vpop.permute.xlu0 %1088 }
 0x4e2   :  { %1284 = vperm.xlu0 %2386, %v1270_v55   ;;  %1289 = vperm.xlu1 %2385, %v1271_v31  }
 0x4e4   :  { %v3490_v52 = vpop.permute.xlu1 %1050  ;;  %v3492_v60 = vpop.permute.xlu0 %988 }
 0x4e6   :  { %1274 = vperm.xlu0 %2386, %v1268_v23   ;;  %1279 = vperm.xlu1 %2385, %v1269_v14  }
 0x4e8   :  { %v3494_v56 = vpop.permute.xlu1 %1038  ;;  %v3496_v1 = vpop.permute.xlu0 %1012 }
 0x4e9   :  { %4217 = vst [vmem:[#allocation56_spill] sm:$0xff] %v3494_v56  ;;  %4218 = vst [vmem:[#allocation57_spill] sm:$0xff] %v3496_v1 }
 0x4ec   :  { %v1029_v19 = vpop.permute.xlu1 %1028  ;;  %v3498_v27 = vpop.permute.xlu0 %1078 }
 0x4ed   :  { %4219 = vst [vmem:[#allocation58_spill] sm:$0xff] %v3498_v27  ;;  %v715_v27 = vsel %vm461_vm9, %v3366_v41, %v2973_v29  ;;  %v1193_v41 = vsel %vm217_vm4, %v3119_v12, %v1001_v8 }
 0x4f0   :  { %v1003_v40 = vpop.permute.xlu1 %1002  ;;  %v1065_v17 = vpop.permute.xlu0 %1064 }
 0x4f4   :  { %v3500_v44 = vpop.permute.xlu1 %1052  ;;  %v3502_v33 = vpop.permute.xlu0 %1090 }
 0x4f8   :  { %v3504_v55 = vpop.permute.xlu1 %1014  ;;  %v3506_v31 = vpop.permute.xlu0 %990 }
 0x4f9   :  { %4220 = vst [vmem:[#allocation59_spill] sm:$0xff] %v3504_v55  ;;  %v1194_v55 = vsel %vm217_vm4, %v3202_v45, %v1003_v40  ;;  %v4230_v40 = vld [vmem:[#allocation12_spill] sm:$0xff] }
 0x4fc   :  { %v3508_v58 = vpop.permute.xlu1 %1040  ;;  %v1067_v23 = vpop.permute.xlu0 %1066 }
 0x4fd   :  { %4221 = vst [vmem:[#allocation60_spill] sm:$0xff] %v3508_v58  ;;  %v1226_v14 = vsel %vm217_vm4, %v3289_v46, %v1067_v23 }
 0x4fe   :  { %2238 = vmatpush3.msra.mxu0 %v1226_v14 }
 0x500   :  { %v1031_v56 = vpop.permute.xlu1 %1030  ;;  %v1093_v7 = vpop.permute.xlu0 %1092 }
 0x504   :  { %v3512_v13 = vpop.permute.xlu1 %1080  ;;  %v3514_v47 = vpop.permute.xlu0 %1054 }
 0x508   :  { %v993_v62 = vpop.permute.xlu1 %992  ;;  %v3516_v49 = vpop.permute.xlu0 %1042 }
 0x509   :  { %4222 = vst [vmem:[#allocation61_spill] sm:$0xff] %v3516_v49 }
 0x50c   :  { %v3518_v30 = vpop.permute.xlu1 %1016  ;;  %v1095_v3 = vpop.permute.xlu0 %1094 }
 0x510   :  { %v1033_v15 = vpop.permute.xlu1 %1032  ;;  %v1057_v5 = vpop.permute.xlu0 %1056 }
 0x511   :  { %v1209_v50 = vsel %vm217_vm4, %v3319_v43, %v1033_v15  ;;  %v4224_v43 = vld [vmem:[#allocation21_spill] sm:$0xff] }
 0x514   :  { %v3520_v58 = vpop.permute.xlu1 %1082  ;;  %v3522_v1 = vpop.permute.xlu0 %1018 }
 0x518   :  { %v995_v46 = vpop.permute.xlu1 %994  ;;  %v3524_v23 = vpop.permute.xlu0 %1020 }
 0x51c   :  { %v3526_v14 = vpop.permute.xlu1 %1044  ;;  %v3531_v48 = vpop.permute.xlu0 %1070 }
 0x51d   :  { %4223 = vst [vmem:[#allocation62_spill] sm:$0xff] %v3526_v14  ;;  %v719_v14 = vsel %vm90_vm2, %v3372_v9, %v2951_v2  ;;  %v1192_v2 = vsel %vm217_vm4, %v4224_v43, %v3444_v32  ;;  %v4225_v9 = vld [vmem:[#allocation33_spill] sm:$0xff] }
 0x51e   :  { %v1207_v12 = vsel %vm217_vm4, %v4225_v9, %v1029_v19  ;;  %v1239_v19 = vsel %vm217_vm4, %v3275_v35, %v1093_v7  ;;  %v1238_v35 = vsel %vm217_vm4, %v3231_v20, %v3502_v33  ;;  %v1221_v33 = vsel %vm217_vm4, %v3333_v24, %v1057_v5  ;;  %v4241_v43 = vld [vmem:[#allocation29_spill] sm:$0xff] }
 0x51f   :  { %v1220_v24 = vsel %vm217_vm4, %v3283_v39, %v3514_v47  ;;  %v4237_v39 = vld [vmem:[#allocation38_spill] sm:$0xff] }
 0x520   :  { %v1035_v49 = vpop.permute.xlu1 %1034  ;;  %v1219_v47 = vsel %vm217_vm4, %v4237_v39, %v3500_v44  ;;  %v4269_v39 = vld [vmem:[#allocation61_spill] sm:$0xff] }
 0x521   :  { %v1210_v6 = vsel %vm217_vm4, %v715_v27, %v1035_v49  ;;  %v1225_v49 = vsel %vm217_vm4, %v3224_v18, %v1065_v17  ;;  %v4227_v18 = vld [vmem:[#allocation31_spill] sm:$0xff]  ;;  %v717_v17 = vsel %vm530_vm8, %v3377_v11, %v4230_v40 }
 0x522   :  { %2193 = vmatprep.subr.mxu1 %v1210_v6  ;;  %v1208_v6 = vsel %vm217_vm4, %v3251_v34, %v1031_v56  ;;  %v4226_v34 = vld [vmem:[#allocation14_spill] sm:$0xff]  ;;  %v1224_v8 = vsel %vm217_vm4, %v4227_v18, %v3470_v4  ;;  %v4254_v40 = vld [vmem:[#allocation35_spill] sm:$0xff] }
 0x523   :  { %2194 = vmatpush3.msra.mxu1 %v1194_v55  ;;  %v713_v15 = vsel %vm90_vm2, %v3397_v61, %v4226_v34  ;;  %v4229_v61 = vld [vmem:[#allocation27_spill] sm:$0xff]  ;;  %v1190_v55 = vsel %vm217_vm4, %v3352_v42, %v995_v46  ;;  %v1189_v42 = vsel %vm217_vm4, %v3297_v59, %v993_v62  ;;  %v4232_v46 = vld [vmem:[#allocation32_spill] sm:$0xff]  ;;  %v4234_v59 = vld [vmem:[#allocation22_spill] sm:$0xff] }
 0x524   :  { %2195 = vmatprep.subr.mxu1 %v1209_v50  ;;  %v1085_v51 = vpop.permute.xlu1 %1084  ;;  %v1097_v29 = vpop.permute.xlu0 %1096  ;;  %v1240_v50 = vsel %vm217_vm4, %v3327_v37, %v1095_v3  ;;  %v4228_v37 = vld [vmem:[#allocation20_spill] sm:$0xff]  ;;  %v1206_v4 = vsel %vm217_vm4, %v4229_v61, %v3468_v54  ;;  %v1237_v20 = vsel %vm217_vm4, %v4232_v46, %v3482_v53  ;;  %v1236_v62 = vsel %vm217_vm4, %v4234_v59, %v3446_v16  ;;  %v4235_v53 = vld [vmem:[#allocation15_spill] sm:$0xff]  ;;  %v4236_v16 = vld [vmem:[#allocation34_spill] sm:$0xff] }
 0x525   :  { %2196 = vmatpush3.msra.mxu1 %v1193_v41  ;;  %v1241_v45 = vsel %vm217_vm4, %v719_v14, %v1097_v29  ;;  %v1223_v3 = vsel %vm217_vm4, %v4228_v37, %v3439_v10  ;;  %v4231_v14 = vld [vmem:[#allocation16_spill] sm:$0xff]  ;;  %v4233_v29 = vld [vmem:[#allocation10_spill] sm:$0xff]  ;;  %v718_v5 = vsel %vm461_vm9, %v3370_v22, %v4235_v53  ;;  %v1187_v22 = vsel %vm217_vm4, %v4236_v16, %v3492_v60  ;;  %v4239_v60 = vld [vmem:[#allocation17_spill] sm:$0xff] }
 0x526   :  { %2197 = vmatprep.subr.mxu1 %v1208_v6  ;;  %2239 = vmatprep.subr.mxu0 %v1241_v45  ;;  %v1205_v11 = vsel %vm217_vm4, %v4231_v14, %v3428_v0  ;;  %v1204_v41 = vsel %vm217_vm4, %v4233_v29, %v3407_v63  ;;  %v1188_v0 = vsel %vm217_vm4, %v3237_v36, %v3506_v31  ;;  %v4245_v34 = vld [vmem:[#allocation59_spill] sm:$0xff]  ;;  %v4259_v46 = vld [vmem:[#allocation62_spill] sm:$0xff]  ;;  %v4263_v59 = vld [vmem:[#allocation37_spill] sm:$0xff] }
 0x527   :  { %2198 = vmatpush3.msra.mxu1 %v1192_v2  ;;  %2240 = vmatpush3.msra.mxu0 %v1225_v49  ;;  %v1203_v36 = vsel %vm217_vm4, %v3385_v26, %v3524_v23  ;;  %v1235_v31 = vsel %vm217_vm4, %v718_v5, %v1085_v51  ;;  %v1202_v45 = vsel %vm217_vm4, %v3338_v57, %v3522_v1  ;;  %v4238_v26 = vld [vmem:[#allocation24_spill] sm:$0xff]  ;;  %v4257_v14 = vld [vmem:[#allocation55_spill] sm:$0xff]  ;;  %v4261_v29 = vld [vmem:[#allocation54_spill] sm:$0xff] }
 0x528   :  { %2199 = vmatprep.subr.mxu1 %v1207_v12  ;;  %v997_v56 = vpop.permute.xlu1 %996  ;;  %2241 = vmatprep.subr.mxu0 %v1240_v50  ;;  %v1059_v32 = vpop.permute.xlu0 %1058  ;;  %v1186_v23 = vsel %vm217_vm4, %v4238_v26, %v3454_v21  ;;  %v1234_v51 = vsel %vm217_vm4, %v3325_v28, %v3520_v58  ;;  %v4240_v49 = vld [vmem:[#allocation8_spill] sm:$0xff]  ;;  %v1218_v2 = vsel %vm217_vm4, %v4241_v43, %v3490_v52  ;;  %v4242_v58 = vld [vmem:[#allocation41_spill] sm:$0xff]  ;;  %v4244_v50 = vld [vmem:[#allocation23_spill] sm:$0xff] }
 0x529   :  { %2242 = vmatpush3.msra.mxu0 %v1224_v8  ;;  %v1191_v27 = vsel %vm217_vm4, %v713_v15, %v997_v56  ;;  %v1222_v7 = vsel %vm217_vm4, %v717_v17, %v1059_v32  ;;  %v712_v44 = vsel %vm461_vm9, %v4240_v49, %v4239_v60  ;;  %v1201_v21 = vsel %vm217_vm4, %v3305_v25, %v3518_v30  ;;  %v4243_v12 = vld [vmem:[#allocation53_spill] sm:$0xff]  ;;  %v4246_v15 = vld [vmem:[#allocation39_spill] sm:$0xff]  ;;  %v4248_v30 = vld [vmem:[#allocation48_spill] sm:$0xff] }
 0x52a   :  { %2200 = vmatpush3.msra.mxu1 %v1191_v27  ;;  %2243 = vmatprep.subr.mxu0 %v1239_v19  ;;  %v1185_v28 = vsel %vm217_vm4, %v712_v44, %v3414_v38  ;;  %v1233_v1 = vsel %vm217_vm4, %v4242_v58, %v3512_v13  ;;  %v1217_v52 = vsel %vm217_vm4, %v4244_v50, %v4243_v12  ;;  %v4247_v25 = vld [vmem:[#allocation13_spill] sm:$0xff]  ;;  %v4249_v38 = vld [vmem:[#allocation44_spill] sm:$0xff]  ;;  %v4250_v56 = vld [vmem:[#allocation7_spill] sm:$0xff] }
 0x52b   :  { %2201 = vmatprep.subr.mxu1 %v1206_v4  ;;  %2244 = vmatpush3.msra.mxu0 %v1223_v3  ;;  %v1200_v18 = vsel %vm217_vm4, %v4246_v15, %v4245_v34  ;;  %v716_v8 = vsel %vm90_vm2, %v4248_v30, %v4247_v25  ;;  %v1184_v13 = vsel %vm217_vm4, %v4250_v56, %v4249_v38  ;;  %v4251_v32 = vld [vmem:[#allocation58_spill] sm:$0xff]  ;;  %v4252_v27 = vld [vmem:[#allocation36_spill] sm:$0xff]  ;;  %v4253_v4 = vld [vmem:[#allocation57_spill] sm:$0xff] }
 0x52c   :  { %2202 = vmatpush3.msra.mxu1 %v1190_v55  ;;  %v3579_v10 = vpop.permute.xlu1 %1068  ;;  %2245 = vmatprep.subr.mxu0 %v1238_v35  ;;  %v3581_v54 = vpop.permute.xlu0 %1006  ;;  %v1232_v19 = vsel %vm217_vm4, %v4252_v27, %v4251_v32  ;;  %v1199_v17 = vsel %vm217_vm4, %v4254_v40, %v4253_v4  ;;  %v4255_v55 = vld [vmem:[#allocation42_spill] sm:$0xff]  ;;  %v4265_v5 = vld [vmem:[#allocation52_spill] sm:$0xff]  ;;  %v4267_v16 = vld [vmem:[#allocation19_spill] sm:$0xff] }
 0x52d   :  { %2203 = vmatprep.subr.mxu1 %v1205_v11  ;;  %2246 = vmatpush3.msra.mxu0 %v1222_v7  ;;  %v4256_v35 = vld [vmem:[#allocation6_spill] sm:$0xff]  ;;  %v4271_v60 = vld [vmem:[#allocation51_spill] sm:$0xff]  ;;  %v4273_v43 = vld [vmem:[#allocation60_spill] sm:$0xff] }
 0x52e   :  { %2204 = vmatpush3.msra.mxu1 %v1189_v42  ;;  %2247 = vmatprep.subr.mxu0 %v1237_v20  ;;  %v1183_v7 = vsel %vm217_vm4, %v4256_v35, %v4255_v55  ;;  %v4258_v11 = vld [vmem:[#allocation26_spill] sm:$0xff]  ;;  %v4272_v49 = vld [vmem:[#allocation11_spill] sm:$0xff]  ;;  %v4278_v50 = vld [vmem:[#allocation49_spill] sm:$0xff]  ;;  %v4284_v35 = vmov 0.0  }
 0x52f   :  { %2205 = vmatprep.subr.mxu1 %v1204_v41  ;;  %2248 = vmatpush3.msra.mxu0 %v1221_v33  ;;  %v1231_v42 = vsel %vm217_vm4, %v4258_v11, %v4257_v14  ;;  %v4260_v20 = vld [vmem:[#allocation46_spill] sm:$0xff]  ;;  %v4262_v41 = vld [vmem:[#allocation25_spill] sm:$0xff]  ;;  %v1229_v44 = vsel %vm217_vm4, %v4272_v49, %v4271_v60  ;;  %v4279_v34 = vld [vmem:[#allocation56_spill] sm:$0xff] }
 0x530   :  { %v3608_v6 = vpop.permute.xlu1 %974  ;;  %2206 = vmatpush3.msra.mxu1 %v1188_v0  ;;  %2249 = vmatprep.subr.mxu0 %v1236_v62  ;;  %v3610_v63 = vpop.permute.xlu0 %588  ;;  %v1215_v33 = vsel %vm217_vm4, %v4260_v20, %v4259_v46  ;;  %v1198_v0 = vsel %vm217_vm4, %v4262_v41, %v4261_v29  ;;  %v4264_v62 = vld [vmem:[#allocation5_spill] sm:$0xff]  ;;  %v4280_v15 = vld [vmem:[#allocation30_spill] sm:$0xff]  ;;  %v4282_v56 = vld [vmem:[#allocation47_spill] sm:$0xff] }
 0x531   :  { %2207 = vmatprep.subr.mxu1 %v1203_v36  ;;  %2250 = vmatpush3.msra.mxu0 %v1220_v24  ;;  %v1182_v53 = vsel %vm217_vm4, %v4264_v62, %v4263_v59  ;;  %v4266_v24 = vld [vmem:[#allocation18_spill] sm:$0xff]  ;;  %v1250_v32 = vld [vmem:[%s4146_s3 + $0x10] sm:$0xff]  ;;  %v1261_v55 = vld [vmem:[%s4146_s3 + $0x68] sm:$0xff] }
 0x532   :  { %2208 = vmatpush3.msra.mxu1 %v1187_v22  ;;  %2251 = vmatprep.subr.mxu0 %v1235_v31  ;;  %v1230_v36 = vsel %vm217_vm4, %v4266_v24, %v4265_v5  ;;  %v4268_v22 = vld [vmem:[#allocation50_spill] sm:$0xff]  ;;  %v1265_v62 = vld [vmem:[%s4146_s3 + $0x88] sm:$0x3f] }
 0x533   :  { %2209 = vmatprep.subr.mxu1 %v1202_v45  ;;  %2252 = vmatpush3.msra.mxu0 %v1219_v47  ;;  %v714_v31 = vsel %vm530_vm8, %v4268_v22, %v4267_v16  ;;  %v4270_v47 = vld [vmem:[#allocation43_spill] sm:$0xff]  ;;  %v1255_v40 = vld [vmem:[%s4146_s3 + $0x38] sm:$0xff]  ;;  %v1262_v22 = vld [vmem:[%s4146_s3 + $0x70] sm:$0xff] }
 0x534   :  { %v518_v9 = vpop.permute.xlu1 %517  ;;  %2210 = vmatpush3.msra.mxu1 %v1186_v23  ;;  %2253 = vmatprep.subr.mxu0 %v1234_v51  ;;  %v1047_v57 = vpop.permute.xlu0 %1046  ;;  %v1214_v45 = vsel %vm217_vm4, %v4270_v47, %v4269_v39  ;;  %v1260_v46 = vld [vmem:[%s4146_s3 + $0x60] sm:$0xff]  ;;  %v1263_v59 = vld [vmem:[%s4146_s3 + $0x78] sm:$0x3f]  ;;  %v1257_v16 = vld [vmem:[%s4146_s3 + $0x48] sm:$0xff] }
 0x535   :  { %2211 = vmatprep.subr.mxu1 %v1201_v21  ;;  %2254 = vmatpush3.msra.mxu0 %v1218_v2  ;;  %v1216_v37 = vsel %vm217_vm4, %v716_v8, %v1047_v57  ;;  %v4274_v2 = vld [vmem:[#allocation40_spill] sm:$0xff]  ;;  %v4281_v8 = vld [vmem:[#allocation9_spill] sm:$0xff]  ;;  %v1264_v20 = vld [vmem:[%s4146_s3 + $0x80] sm:$0x3f] }
 0x536   :  { %2212 = vmatpush3.msra.mxu1 %v1185_v28  ;;  %2255 = vmatprep.subr.mxu0 %v1233_v1  ;;  %v1213_v57 = vsel %vm217_vm4, %v4274_v2, %v4273_v43  ;;  %v4275_v21 = vld [vmem:[#allocation28_spill] sm:$0xff]  ;;  %v4277_v1 = vld [vmem:[#allocation45_spill] sm:$0xff]  ;;  %v1180_v38 = vsel %vm217_vm4, %v4281_v8, %v3608_v6  ;;  %v4283_v6 = vld [vmem:[#allocation3_spill] sm:$0xff] }
 0x537   :  { %2213 = vmatprep.subr.mxu1 %v1200_v18  ;;  %2256 = vmatpush3.msra.mxu0 %v1217_v52  ;;  %v4276_v28 = vld [vmem:[#allocation4_spill] sm:$0xff]  ;;  %v1196_v12 = vsel %vm217_vm4, %v4277_v1, %v3581_v54  ;;  %v1228_v52 = vsel %vm217_vm4, %v4278_v50, %v3531_v48  ;;  %v1212_v18 = vsel %vm217_vm4, %v4280_v15, %v4279_v34 }
 0x538   :  { %v973_v3 = vpop.permute.xlu1 %972  ;;  %2214 = vmatpush3.msra.mxu1 %v1184_v13  ;;  %2257 = vmatprep.subr.mxu0 %v1232_v19  ;;  %v1037_v61 = vpop.permute.xlu0 %1036  ;;  %v1181_v58 = vsel %vm217_vm4, %v4276_v28, %v4275_v21  ;;  %v1227_v48 = vsel %vm217_vm4, %v4282_v56, %v3579_v10  ;;  %v1248_v13 = vld [vmem:[%s4146_s3] sm:$0xff]  ;;  %v1254_v10 = vld [vmem:[%s4146_s3 + $0x30] sm:$0xff] }
 0x539   :  { %2215 = vmatprep.subr.mxu1 %v1199_v17  ;;  %2258 = vmatpush3.msra.mxu0 %v1216_v37  ;;  %v1211_v27 = vsel %vm217_vm4, %v3610_v63, %v1037_v61  ;;  %v1256_v19 = vld [vmem:[%s4146_s3 + $0x40] sm:$0xff]  ;;  %v1253_v61 = vld [vmem:[%s4146_s3 + $0x28] sm:$0xff]  ;;  %v1259_v17 = vld [vmem:[%s4146_s3 + $0x58] sm:$0xff] }
 0x53a   :  { %2216 = vmatpush3.msra.mxu1 %v1183_v7  ;;  %2259 = vmatprep.subr.mxu0 %v1231_v42  ;;  %v1258_v42 = vld [vmem:[%s4146_s3 + $0x50] sm:$0xff] }
 0x53b   :  { %2217 = vmatprep.subr.mxu1 %v1198_v0  ;;  %2260 = vmatpush3.msra.mxu0 %v1215_v33  ;;  %v1266_v33 = vld [vmem:[%s4146_s3 + $0x90] sm:$0x3f] }
 0x53c   :  { %v1009_v26 = vpop.permute.xlu1 %1008  ;;  %2218 = vmatpush3.msra.mxu1 %v1182_v53  ;;  %2261 = vmatprep.subr.mxu0 %v1230_v36  ;;  %v1005_v23 = vpop.permute.xlu0 %1004  ;;  %v1252_v53 = vld [vmem:[%s4146_s3 + $0x20] sm:$0xff] }
 0x53d   :  { %2262 = vmatpush3.msra.mxu0 %v1214_v45  ;;  %v1197_v51 = vsel %vm217_vm4, %v714_v31, %v1009_v26  ;;  %v1195_v54 = vsel %vm217_vm4, %v518_v9, %v1005_v23  ;;  %v1179_v9 = vsel %vm217_vm4, %v4283_v6, %v973_v3  ;;  %v1267_v31 = vld [vmem:[%s4146_s3 + $0x98] sm:$0x3f]  ;;  %s4285_s3 = smov 115  }
 0x53e   :  { %2219 = vmatprep.subr.mxu1 %v1197_v51  ;;  %2263 = vmatprep.subr.mxu0 %v1229_v44 }
 0x53f   :  { %2220 = vmatpush3.msra.mxu1 %v1181_v58  ;;  %2264 = vmatpush3.msra.mxu0 %v1213_v57 }
 0x540   :  { %v1109_v25 = vpop.permute.xlu1 %1108  ;;  %2221 = vmatprep.subr.mxu1 %v1196_v12  ;;  %2265 = vmatprep.subr.mxu0 %v1228_v52  ;;  %v704_v30 = vpop.permute.xlu0 %703 }
 0x541   :  { %2222 = vmatpush3.msra.mxu1 %v1180_v38  ;;  %2266 = vmatpush3.msra.mxu0 %v1212_v18  ;;  %v1247_v37 = vsel %vm217_vm4, %v704_v30, %v1109_v25 }
 0x542   :  { %2223 = vmatprep.subr.mxu1 %v1195_v54  ;;  %2267 = vmatprep.subr.mxu0 %v1227_v48 }
 0x543   :  { %2224 = vmatpush3.msra.mxu1 %v1179_v9  ;;  %2268 = vmatpush3.msra.mxu0 %v1211_v27 }
 0x544   :  { %v1107_v4 = vpop.permute.xlu1 %1106  ;;  %1373 = vmatmul.mubr.f32.vlgmr.msra.gmra.mxu1 %v1248_v13  ;;  %1458 = vmatmul.mubr.f32.vlgmr.msra.gmra.mxu0 %v1250_v32  ;;  %v702_v63 = vpop.permute.xlu0 %701 }
 0x545   :  { %2337 = vmatprep.subr.msk.mxu0 %vm530_vm8, %v1247_v37  ;;  %v1246_v3 = vsel %vm217_vm4, %v702_v63, %v1107_v4  ;;  %1377 = vmatprep.mubr.f32.mxu1 %v1254_v10 }
 0x546   :  { %2338 = vmatpush3.msk.msra.mxu0 %vm530_vm8, %v1247_v37  ;;  %1462 = vmatprep.mubr.f32.mxu0 %v1256_v19 }
 0x547   :  { %2339 = vmatprep.subr.mxu0 %v1246_v3  ;;  %1972 = vmatprep.subr.mxu1 %v4284_v35 }
 0x548   :  { %2340 = vmatpush3.msra.mxu0 %v1246_v3  ;;  %v1105_v7 = vpop.permute.xlu1 %1104  ;;  %1378 = vmatmul.mubr.f32.gmra.mxu1 %v1253_v61  ;;  %v700_v14 = vpop.permute.xlu0 %699 }
 0x549   :  { %1463 = vmatmul.mubr.f32.gmra.mxu0 %v1255_v40  ;;  %v1245_v11 = vsel %vm217_vm4, %v700_v14, %v1105_v7  ;;  %1382 = vmatprep.mubr.f32.mxu1 %v1259_v17 }
 0x54a   :  { %2341 = vmatprep.subr.mxu0 %v1245_v11  ;;  %1467 = vmatprep.mubr.f32.mxu0 %v1261_v55 }
 0x54b   :  { %2342 = vmatpush3.msra.mxu0 %v1245_v11 }
 0x54c   :  { %v1103_v29 = vpop.permute.xlu1 %1102  ;;  %1383 = vmatmul.mubr.f32.gmra.mxu1 %v1258_v42  ;;  %v698_v41 = vpop.permute.xlu0 %697 }
 0x54d   :  { %1468 = vmatmul.mubr.f32.gmra.mxu0 %v1260_v46  ;;  %v1244_v0 = vsel %vm217_vm4, %v698_v41, %v1103_v29  ;;  %1387 = vmatprep.mubr.f32.mxu1 %v1264_v20 }
 0x54e   :  { %2343 = vmatprep.subr.mxu0 %v1244_v0  ;;  %1472 = vmatprep.mubr.f32.mxu0 %v1266_v33 }
 0x54f   :  { %2344 = vmatpush3.msra.mxu0 %v1244_v0 }
 0x550   :  { %v1101_v5 = vpop.permute.xlu1 %1100  ;;  %1388 = vmatmul.mubr.f32.gmra.mxu1 %v1263_v59  ;;  %v696_v24 = vpop.permute.xlu0 %695 }
 0x551   :  { %1473 = vmatmul.mubr.f32.gmra.mxu0 %v1265_v62  ;;  %v1243_v36 = vsel %vm217_vm4, %v696_v24, %v1101_v5 }
 0x552   :  { %2345 = vmatprep.subr.mxu0 %v1243_v36  ;;  %2347 = vmatprep.mubr.msk.f32.mxu0 %vm1292_vm10, %v1252_v53 }
 0x553   :  { %2346 = vmatpush3.msra.mxu0 %v1243_v36 }
 0x554   :  { %2353 = vmatprep.subr.mxu0 %v4284_v35 }
 0x555   :  { %2348 = vmatmul.mubr.msk.f32.vlgmr.msra.gmra.mxu0 %vm1292_vm10, %v1257_v16 }
 0x556   :  { %2350 = vmatprep.mubr.msk.f32.mxu0 %vm1292_vm10, %v1262_v22 }
 0x559   :  { %2351 = vmatmul.mubr.msk.f32.gmra.mxu0 %vm1292_vm10, %v1267_v31 }
 0x55a   :  { %2359 = vmatprep.mubr.msk.f32.mxu0 %vm2410_vm3, %v4284_v35 }
 0x55d   :  { %v1290_v51 = vpop.permute.xlu1 %1289  ;;  %v1285_v44 = vpop.permute.xlu0 %1284 }
 0x561   :  { %v1280_v1 = vpop.permute.xlu1 %1279  ;;  %v1275_v34 = vpop.permute.xlu0 %1274 }
 0x604   :  { %v2225_v39 = vpop.f32.mrf.mxu1  ;;  %v2269_v47 = vpop.f32.mrf.mxu0 }
 0x606   :  { %v2226_v45 = vpop.f32.mrf.mxu1  ;;  %v2270_v26 = vpop.f32.mrf.mxu0 }
 0x607   :  { %v2227_v28 = vadd.f32 %v2226_v45, %v2225_v39  ;;  %v2271_v54 = vadd.f32 %v2270_v26, %v2269_v47 }
 0x608   :  { %v2228_v23 = vpop.f32.mrf.mxu1 }
 0x609   :  { %v2272_v60 = vpop.f32.mrf.mxu0  ;;  %v1375_v18 = vadd.f32 %v2227_v28, %v1275_v34 }
 0x60a   :  { %v2229_v49 = vpop.f32.mrf.mxu1 }
 0x60b   :  { %v2273_v43 = vpop.f32.mrf.mxu0  ;;  %v2230_v2 = vadd.f32 %v2229_v49, %v2228_v23  ;;  %v1460_v9 = vadd.f32 %v2271_v54, %v1375_v18 }
 0x60c   :  { %v2231_v57 = vpop.f32.mrf.mxu1  ;;  %v2274_v25 = vadd.f32 %v2273_v43, %v2272_v60 }
 0x60d   :  { %v2275_v21 = vpop.f32.mrf.mxu0  ;;  %v1380_v50 = vadd.f32 %v2230_v2, %v1280_v1 }
 0x60e   :  { %v2232_v58 = vpop.f32.mrf.mxu1 }
 0x60f   :  { %v2276_v12 = vpop.f32.mrf.mxu0  ;;  %v2233_v56 = vadd.f32 %v2232_v58, %v2231_v57  ;;  %v1465_v48 = vadd.f32 %v2274_v25, %v1380_v50 }
 0x610   :  { %v2234_v52 = vpop.f32.mrf.mxu1  ;;  %v2277_v61 = vadd.f32 %v2276_v12, %v2275_v21 }
 0x611   :  { %v2278_v15 = vpop.f32.mrf.mxu0  ;;  %v1385_v37 = vadd.f32 %v2233_v56, %v1285_v44 }
 0x612   :  { %v2235_v30 = vpop.f32.mrf.mxu1 }
 0x613   :  { %v2236_v8 = vadd.f32 %v2235_v30, %v2234_v52  ;;  %v2279_v38 = vpop.f32.mrf.mxu0  ;;  %v1470_v14 = vadd.f32 %v2277_v61, %v1385_v37 }
 0x614   :  { %v2280_v32 = vadd.f32 %v2279_v38, %v2278_v15 }
 0x615   :  { %v1390_v13 = vadd.f32 %v2236_v8, %v1290_v51  ;;  %v2349_v27 = vpop.f32.mrf.mxu0 }
 0x616   :  { %v1550_v6 = vadd.f32 %v2349_v27, %v1465_v48 }
 0x617   :  { %v1544_v10 = vpop.f32.mrf.mxu0  ;;  %v1475_v19 = vadd.f32 %v2280_v32, %v1390_v13 }
 0x618   :  { %v1564_v4 = vmax.f32 %v1550_v6, 0.0  ;;  %v1545_v63 = vadd.f32 %v1544_v10, %v1460_v9 }
 0x619   :  { %v2352_v3 = vpop.f32.mrf.mxu0 }
 0x61a   :  { %v1563_v40 = vmax.f32 %v1545_v63, 0.0  ;;  %v1560_v17 = vadd.f32 %v2352_v3, %v1475_v19  ;;  %1709 = vrot.lane.b32.xlu1 %v1564_v4, %s4285_s3 }
 0x61b   :  { %v1554_v55 = vpop.f32.mrf.mxu0 }
 0x61c   :  { %v1566_v7 = vmax.f32 %v1560_v17, 0.0  ;;  %1707 = vrot.lane.b32.xlu0 %v1563_v40, %s4285_s3  ;;  %v1555_v11 = vadd.f32 %v1554_v55, %v1470_v14 }
 0x61e   :  { %1713 = vrot.lane.b32.xlu1 %v1566_v7, %s4285_s3  ;;  %v1565_v42 = vmax.f32 %v1555_v11, 0.0 }
 0x620   :  { %1571 = vrot.lane.b32.xlu0 %v1563_v40, %s2413_s4 }
 0x622   :  { %1573 = vrot.lane.b32.xlu1 %v1564_v4, %s2413_s4 }
 0x624   :  { %1711 = vrot.lane.b32.xlu0 %v1565_v42, %s4285_s3 }
 0x626   :  { %1577 = vrot.lane.b32.xlu1 %v1566_v7, %s2413_s4 }
 0x628   :  { %1575 = vrot.lane.b32.xlu0 %v1565_v42, %s2413_s4 }
 0x68c   :  { %v1710_v46 = vpop.permute.xlu1 %1709 }
 0x68d   :  { %v1720_v20 = vsel %vm1583_vm11, 0.0, %v1710_v46 }
 0x68e   :  { %v3789_v33 = vsel %vm1588_vm12, %v1720_v20, 0.0  ;;  %v1708_v29 = vpop.permute.xlu0 %1707 }
 0x68f   :  { %v1719_v41 = vsel %vm1583_vm11, 0.0, %v1708_v29  ;;  %1787 = vrot.lane.b32.xlu1 %v3789_v33, %s2393_s13  ;;  %v1770_v45 = vrot.slane %v3789_v33, 6  ;;  %v1732_v60 = vrot.slane %v3789_v33, 2  ;;  %v1751_v58 = vrot.slane %v3789_v33, 4 }
 0x690   :  { %v3795_v0 = vsel %vm1588_vm12, %v1719_v41, 0.0  ;;  %v1714_v16 = vpop.permute.xlu1 %1713 }
 0x691   :  { %1785 = vrot.lane.b32.xlu0 %v3795_v0, %s2393_s13  ;;  %v1769_v59 = vrot.slane %v3795_v0, 6  ;;  %v1731_v24 = vrot.slane %v3795_v0, 2  ;;  %v1750_v22 = vrot.slane %v3795_v0, 4  ;;  %v1722_v44 = vsel %vm1583_vm11, 0.0, %v1714_v16 }
 0x692   :  { %v1572_v62 = vpop.permute.xlu0 %1571  ;;  %v3833_v57 = vsel %vm1588_vm12, %v1722_v44, 0.0 }
 0x693   :  { %v1584_v53 = vsel %vm1583_vm11, 0.0, %v1572_v62  ;;  %1776 = vrot.lane.b32.xlu1 %v1769_v59, %s2394_s14  ;;  %v1771_v51 = vsel %vm461_vm9, %v1769_v59, %v1770_v45  ;;  %v1733_v43 = vsel %vm530_vm8, %v1731_v24, %v1732_v60  ;;  %v1752_v12 = vsel %vm90_vm2, %v1750_v22, %v1751_v58 }
 0x694   :  { %v3803_v5 = vsel %vm1588_vm12, %v1584_v53, 0.0  ;;  %v1574_v23 = vpop.permute.xlu1 %1573  ;;  %v1736_v50 = vrot.slane %v3833_v57, 2  ;;  %v1755_v15 = vrot.slane %v3833_v57, 4  ;;  %v1774_v27 = vrot.slane %v3833_v57, 6 }
 0x695   :  { %1660 = vrot.lane.b32.xlu0 %v3803_v5, %s2393_s13  ;;  %v1641_v31 = vrot.slane %v3803_v5, 6  ;;  %v1585_v49 = vsel %vm1583_vm11, 0.0, %v1574_v23  ;;  %v3840_v28 = vrot.slane %v3803_v5, 4  ;;  %v3865_v38 = vrot.slane %v3803_v5, 2 }
 0x696   :  { %v1712_v36 = vpop.permute.xlu0 %1711  ;;  %v3829_v2 = vsel %vm1588_vm12, %v1585_v49, 0.0 }
 0x697   :  { %1794 = vrot.lane.b32.xlu1 %v1731_v24, %s2405_s24  ;;  %v1620_v21 = vrot.slane %v3829_v2, 4  ;;  %v1642_v52 = vrot.slane %v3829_v2, 6  ;;  %v1598_v25 = vrot.slane %v3829_v2, 2  ;;  %v1721_v30 = vsel %vm1583_vm11, 0.0, %v1712_v36 }
 0x698   :  { %v1578_v34 = vpop.permute.xlu1 %1577  ;;  %v1725_v56 = vsel %vm1588_vm12, %v1721_v30, 0.0 }
 0x699   :  { %1757 = vrot.lane.b32.xlu0 %v1750_v22, %s2395_s0  ;;  %v3847_v1 = vsel %vm90_vm2, %v3840_v28, %v1620_v21  ;;  %v1587_v18 = vsel %vm1583_vm11, 0.0, %v1578_v34  ;;  %v1643_v8 = vsel %vm461_vm9, %v1641_v31, %v1642_v52  ;;  %v3874_v48 = vsel %vm530_vm8, %v3865_v38, %v1598_v25 }
 0x69a   :  { %v1576_v39 = vpop.permute.xlu0 %1575  ;;  %v3868_v54 = vsel %vm1588_vm12, %v1587_v18, 0.0  ;;  %v1772_v32 = vrot.slane %v1725_v56, 6  ;;  %v1753_v9 = vrot.slane %v1725_v56, 4  ;;  %v1734_v19 = vrot.slane %v1725_v56, 2 }
 0x69b   :  { %v1586_v47 = vsel %vm1583_vm11, 0.0, %v1576_v39  ;;  %1648 = vrot.lane.b32.xlu1 %v1641_v31, %s2394_s14  ;;  %v3879_v13 = vrot.slane %v3868_v54, 2  ;;  %v1624_v10 = vrot.slane %v3868_v54, 4  ;;  %v1646_v14 = vrot.slane %v3868_v54, 6 }
 0x69c   :  { %v3816_v26 = vsel %vm1588_vm12, %v1586_v47, 0.0  ;;  %v1775_v6 = vsel %vm461_vm9, %v1772_v32, %v1774_v27  ;;  %v1754_v37 = vsel %vm90_vm2, %v1751_v58, %v1753_v9  ;;  %v1773_v4 = vsel %vm461_vm9, %v1770_v45, %v1772_v32 }
 0x69d   :  { %1738 = vrot.lane.b32.xlu0 %v1731_v24, %s2396_s15  ;;  %v1737_v63 = vsel %vm530_vm8, %v1734_v19, %v1736_v50  ;;  %v1756_v3 = vsel %vm90_vm2, %v1753_v9, %v1755_v15  ;;  %v1622_v61 = vrot.slane %v3816_v26, 4  ;;  %v1735_v40 = vsel %vm530_vm8, %v1732_v60, %v1734_v19 }
 0x69e   :  { %v1644_v7 = vrot.slane %v3816_v26, 6  ;;  %v1600_v42 = vrot.slane %v3816_v26, 2 }
 0x69f   :  { %1778 = vrot.lane.b32.xlu1 %v1771_v51, %s2394_s14  ;;  %v1625_v17 = vsel %vm90_vm2, %v1622_v61, %v1624_v10  ;;  %v3916_v55 = vsel %vm90_vm2, %v1620_v21, %v1622_v61 }
 0x6a0   :  { %v1647_v11 = vsel %vm461_vm9, %v1644_v7, %v1646_v14  ;;  %v1645_v46 = vsel %vm461_vm9, %v1642_v52, %v1644_v7  ;;  %v3932_v20 = vsel %vm530_vm8, %v1600_v42, %v3879_v13  ;;  %v3940_v29 = vsel %vm530_vm8, %v1598_v25, %v1600_v42  ;;  %v1943_v7 = vld [vmem:[%s4150_s6 + $0x10] sm:$0xf]  ;;  %v1942_v14 = vld [vmem:[%s4150_s6 + $0x8] sm:$0xff] }
 0x6a1   :  { %1806 = vrot.lane.b32.xlu0 %v1750_v22, %s2391_s11 }
 0x6a3   :  { %1740 = vrot.lane.b32.xlu1 %v1733_v43, %s2396_s15 }
 0x6a5   :  { %1791 = vrot.lane.b32.xlu0 %v3833_v57, %s2393_s13 }
 0x6a7   :  { %1796 = vrot.lane.b32.xlu1 %v1733_v43, %s2405_s24 }
 0x6a9   :  { %1626 = vrot.lane.b32.xlu0 %v3840_v28, %s2395_s0 }
 0x6ab   :  { %1628 = vrot.lane.b32.xlu1 %v3847_v1, %s2395_s0 }
 0x6ad   :  { %1759 = vrot.lane.b32.xlu0 %v1752_v12, %s2395_s0 }
 0x6af   :  { %1746 = vrot.lane.b32.xlu1 %v1736_v50, %s2396_s15 }
 0x6b1   :  { %1808 = vrot.lane.b32.xlu0 %v1752_v12, %s2391_s11 }
 0x6b3   :  { %1814 = vrot.lane.b32.xlu1 %v1755_v15, %s2391_s11 }
 0x6b5   :  { %1650 = vrot.lane.b32.xlu0 %v1643_v8, %s2394_s14 }
 0x6b7   :  { %1802 = vrot.lane.b32.xlu1 %v1736_v50, %s2405_s24 }
 0x6b9   :  { %1606 = vrot.lane.b32.xlu0 %v3874_v48, %s2396_s15 }
 0x6bb   :  { %1612 = vrot.lane.b32.xlu1 %v3879_v13, %s2396_s15 }
 0x6bd   :  { %1765 = vrot.lane.b32.xlu0 %v1755_v15, %s2395_s0 }
 0x6bf   :  { %1782 = vrot.lane.b32.xlu1 %v1775_v6, %s2394_s14 }
 0x6c1   :  { %1789 = vrot.lane.b32.xlu0 %v1725_v56, %s2393_s13 }
 0x6c3   :  { %1829 = vrot.lane.b32.xlu1 %v3789_v33, %s2408_s27  ;;  %v14_v33 = vstv %s4148_s8 }
 0x6c4   :  { %15 = vst [vmem:[#allocation2] sm:$0x1] %v14_v33 }
 0x6c5   :  { %1634 = vrot.lane.b32.xlu0 %v1624_v10, %s2395_s0 }
 0x6c7   :  { %1761 = vrot.lane.b32.xlu1 %v1754_v37, %s2395_s0 }
 0x6c9   :  { %1780 = vrot.lane.b32.xlu0 %v1773_v4, %s2394_s14 }
 0x6cb   :  { %1744 = vrot.lane.b32.xlu1 %v1737_v63, %s2396_s15 }
 0x6cd   :  { %1604 = vrot.lane.b32.xlu0 %v3865_v38, %s2396_s15 }
 0x6cf   :  { %1695 = vrot.lane.b32.xlu1 %v1624_v10, %s2391_s11 }
 0x6d1   :  { %1763 = vrot.lane.b32.xlu0 %v1756_v3, %s2395_s0 }
 0x6d3   :  { %1810 = vrot.lane.b32.xlu1 %v1754_v37, %s2391_s11 }
 0x6d5   :  { %1831 = vrot.lane.b32.xlu0 %v1725_v56, %s2408_s27 }
 0x6d7   :  { %1800 = vrot.lane.b32.xlu1 %v1737_v63, %s2405_s24 }
 0x6d9   :  { %1742 = vrot.lane.b32.xlu0 %v1735_v40, %s2396_s15 }
 0x6db   :  { %1632 = vrot.lane.b32.xlu1 %v1625_v17, %s2395_s0 }
 0x6dd   :  { %1827 = vrot.lane.b32.xlu0 %v3795_v0, %s2408_s27 }
 0x6df   :  { %1630 = vrot.lane.b32.xlu1 %v3916_v55, %s2395_s0 }
 0x6e1   :  { %1812 = vrot.lane.b32.xlu0 %v1756_v3, %s2391_s11 }
 0x6e3   :  { %1693 = vrot.lane.b32.xlu1 %v1625_v17, %s2391_s11 }
 0x6e5   :  { %1798 = vrot.lane.b32.xlu0 %v1735_v40, %s2405_s24 }
 0x6e9   :  { %1654 = vrot.lane.b32.xlu0 %v1647_v11, %s2394_s14  ;;  %v1941_v11 = vld [vmem:[%s4150_s6] sm:$0xff] }
 0x6ed   :  { %1652 = vrot.lane.b32.xlu0 %v1645_v46, %s2394_s14  ;;  %v2056_v46 = vld [vmem:[#allocation2] sm:$0x1] }
 0x6f1   :  { %1610 = vrot.lane.b32.xlu0 %v3932_v20, %s2396_s15 }
 0x6f5   :  { %1608 = vrot.lane.b32.xlu0 %v3940_v29, %s2396_s15 }
 0x701   :  { %v3944_v41 = vpop.permute.xlu1 %1787 }
 0x703   :  { %v1786_v0 = vpop.permute.xlu0 %1785 }
 0x704   :  { %1857 = vrot.lane.b32.xlu1 %v1786_v0, %s2408_s27 }
 0x705   :  { %v1777_v59 = vpop.permute.xlu1 %1776 }
 0x707   :  { %v3947_v62 = vpop.permute.xlu0 %1660 }
 0x709   :  { %v1795_v53 = vpop.permute.xlu1 %1794 }
 0x70b   :  { %v1758_v24 = vpop.permute.xlu0 %1757 }
 0x70d   :  { %v1649_v36 = vpop.permute.xlu1 %1648 }
 0x70f   :  { %v1739_v16 = vpop.permute.xlu0 %1738 }
 0x710   :  { %v1817_v23 = vsel %vm530_vm8, %v3833_v57, %v1739_v16 }
 0x711   :  { %v1779_v22 = vpop.permute.xlu1 %1778 }
 0x712   :  { %1851 = vrot.lane.b32.xlu1 %v1779_v22, %s2408_s27 }
 0x713   :  { %v1807_v31 = vpop.permute.xlu0 %1806 }
 0x715   :  { %v1741_v39 = vpop.permute.xlu1 %1740 }
 0x716   :  { %1835 = vrot.lane.b32.xlu1 %v1741_v39, %s2408_s27 }
 0x717   :  { %v1792_v47 = vpop.permute.xlu0 %1791 }
 0x718   :  { %v3952_v45 = vsel %vm530_vm8, %v1792_v47, %v1795_v53 }
 0x719   :  { %v1797_v51 = vpop.permute.xlu1 %1796 }
 0x71a   :  { %1833 = vrot.lane.b32.xlu1 %v1817_v23, %s2408_s27 }
 0x71b   :  { %v1627_v60 = vpop.permute.xlu0 %1626 }
 0x71d   :  { %v3957_v49 = vpop.permute.xlu1 %1628 }
 0x71f   :  { %v1760_v44 = vpop.permute.xlu0 %1759 }
 0x720   :  { %1843 = vrot.lane.b32.xlu0 %v1760_v44, %s2408_s27 }
 0x721   :  { %v1747_v43 = vpop.permute.xlu1 %1746 }
 0x722   :  { %v1818_v21 = vsel %vm90_vm2, %v1747_v43, %v1758_v24 }
 0x723   :  { %1841 = vrot.lane.b32.xlu1 %v1818_v21, %s2408_s27  ;;  %v1809_v58 = vpop.permute.xlu0 %1808 }
 0x725   :  { %v1815_v12 = vpop.permute.xlu1 %1814 }
 0x726   :  { %1879 = vrot.lane.b32.xlu0 %v1815_v12, %s2408_s27 }
 0x727   :  { %v3963_v50 = vpop.permute.xlu0 %1650 }
 0x729   :  { %v1803_v57 = vpop.permute.xlu1 %1802 }
 0x72b   :  { %v3965_v52 = vpop.permute.xlu0 %1606 }
 0x72d   :  { %v1613_v34 = vpop.permute.xlu1 %1612 }
 0x72e   :  { %v3968_v15 = vsel %vm90_vm2, %v1613_v34, %v1627_v60 }
 0x72f   :  { %v1766_v18 = vpop.permute.xlu0 %1765 }
 0x730   :  { %v1819_v25 = vsel %vm461_vm9, %v1766_v18, %v1777_v59 }
 0x731   :  { %v1783_v30 = vpop.permute.xlu1 %1782  ;;  %1849 = vrot.lane.b32.xlu0 %v1819_v25, %s2408_s27 }
 0x732   :  { %1855 = vrot.lane.b32.xlu1 %v1783_v30, %s2408_s27 }
 0x733   :  { %v1790_v8 = vpop.permute.xlu0 %1789 }
 0x735   :  { %1873 = vrot.lane.b32.xlu0 %v1809_v58, %s2408_s27  ;;  %v3977_v27 = vpop.permute.xlu1 %1829 }
 0x737   :  { %v1635_v56 = vpop.permute.xlu0 %1634 }
 0x738   :  { %v3975_v32 = vsel %vm461_vm9, %v1635_v56, %v1649_v36 }
 0x739   :  { %v1762_v10 = vpop.permute.xlu1 %1761 }
 0x73b   :  { %v1781_v6 = vpop.permute.xlu0 %1780 }
 0x73c   :  { %1853 = vrot.lane.b32.xlu1 %v1781_v6, %s2408_s27 }
 0x73d   :  { %v1745_v37 = vpop.permute.xlu1 %1744 }
 0x73f   :  { %v3980_v9 = vpop.permute.xlu0 %1604 }
 0x740   :  { %1691 = vrot.lane.b32.xlu1 %v3916_v55, %s2391_s11 }
 0x741   :  { %v3999_v3 = vpop.permute.xlu1 %1695 }
 0x743   :  { %v1764_v19 = vpop.permute.xlu0 %1763 }
 0x744   :  { %1689 = vrot.lane.b32.xlu1 %v3847_v1, %s2391_s11  ;;  %1847 = vrot.lane.b32.xlu0 %v1764_v19, %s2408_s27  ;;  %v1821_v1 = vsel %vm90_vm2, %v1803_v57, %v1807_v31 }
 0x747   :  { %v3987_v4 = vpop.permute.xlu0 %1831 }
 0x748   :  { %1839 = vrot.lane.b32.xlu1 %v1745_v37, %s2408_s27  ;;  %1845 = vrot.lane.b32.xlu0 %v1762_v10, %s2408_s27 }
 0x74b   :  { %v1743_v63 = vpop.permute.xlu0 %1742 }
 0x74c   :  { %1687 = vrot.lane.b32.xlu0 %v3840_v28, %s2391_s11  ;;  %1837 = vrot.lane.b32.xlu1 %v1743_v63, %s2408_s27  ;;  %v1811_v28 = vpop.permute.xlu1 %1810 }
 0x74f   :  { %v4004_v61 = vpop.permute.xlu0 %1827 }
 0x750   :  { %1678 = vrot.lane.b32.xlu0 %v3932_v20, %s2405_s24  ;;  %1680 = vrot.lane.b32.xlu1 %v3879_v13, %s2405_s24  ;;  %v1801_v13 = vpop.permute.xlu1 %1800 }
 0x753   :  { %v1813_v40 = vpop.permute.xlu0 %1812 }
 0x754   :  { %1676 = vrot.lane.b32.xlu0 %v3940_v29, %s2405_s24  ;;  %1871 = vrot.lane.b32.xlu1 %v1821_v1, %s2408_s27  ;;  %v1633_v55 = vpop.permute.xlu1 %1632  ;;  %v1910_v1 = vsel %vm217_vm4, %v3816_v26, %v3987_v4 }
 0x757   :  { %v1799_v17 = vpop.permute.xlu0 %1798 }
 0x758   :  { %1674 = vrot.lane.b32.xlu0 %v3874_v48, %s2405_s24  ;;  %1865 = vrot.lane.b32.xlu1 %v1797_v51, %s2408_s27  ;;  %v1936_v48 = vld [vmem:[%s4149_s5 + $0x8] sm:$0xff] }
 0x759   :  { %2169 = vmatprep.mubr.msk.f32.mxu1 %vm1959_vm13, %v1936_v48 }
 0x75b   :  { %v1655_v29 = vpop.permute.xlu0 %1654 }
 0x75c   :  { %1672 = vrot.lane.b32.xlu1 %v3865_v38, %s2405_s24  ;;  %1877 = vrot.lane.b32.xlu0 %v1813_v40, %s2408_s27  ;;  %v1631_v38 = vpop.permute.xlu1 %1630 }
 0x75f   :  { %v1653_v0 = vpop.permute.xlu0 %1652 }
 0x760   :  { %1869 = vrot.lane.b32.xlu1 %v1801_v13, %s2408_s27  ;;  %1875 = vrot.lane.b32.xlu0 %v1811_v28, %s2408_s27  ;;  %v4039_v42 = vpop.permute.xlu1 %1693 }
 0x763   :  { %v1611_v53 = vpop.permute.xlu0 %1610 }
 0x764   :  { %1666 = vrot.lane.b32.xlu0 %v3868_v54, %s2393_s13  ;;  %1867 = vrot.lane.b32.xlu1 %v1799_v17, %s2408_s27 }
 0x767   :  { %v1609_v36 = vpop.permute.xlu0 %1608 }
 0x768   :  { %1863 = vrot.lane.b32.xlu0 %v3952_v45, %s2408_s27  ;;  %1664 = vrot.lane.b32.xlu1 %v3816_v26, %s2393_s13 }
 0x76c   :  { %1861 = vrot.lane.b32.xlu0 %v1790_v8, %s2408_s27  ;;  %1662 = vrot.lane.b32.xlu1 %v3829_v2, %s2393_s13 }
 0x770   :  { %1859 = vrot.lane.b32.xlu0 %v3944_v41, %s2408_s27  ;;  %1956 = vperm.xlu1 %2385, %v1943_v7  }
 0x774   :  { %1951 = vperm.xlu0 %2386, %v1942_v14   ;;  %1946 = vperm.xlu1 %2385, %v1941_v11  }
 0x776   :  { %v1858_v20 = vpop.permute.xlu1 %1857 }
 0x777   :  { %v1923_v33 = vsel %vm217_vm4, %v3947_v62, %v1858_v20 }
 0x778   :  { %1973 = vmatpush1.msra.mxu1 %v1923_v33  ;;  %2059 = vperm.xlu0 %2386, %v2056_v46  }
 0x779   :  { %1974 = vmatprep.subr.mxu1 %v4284_v35 }
 0x784   :  { %v1852_v41 = vpop.permute.xlu1 %1851 }
 0x785   :  { %v1920_v51 = vsel %vm217_vm4, %v3963_v50, %v1852_v41 }
 0x788   :  { %v1836_v59 = vpop.permute.xlu1 %1835 }
 0x789   :  { %v1912_v10 = vsel %vm217_vm4, %v3965_v52, %v1836_v59  ;;  %v1935_v59 = vld [vmem:[%s4149_s5] sm:$0xff] }
 0x78c   :  { %v1834_v24 = vpop.permute.xlu1 %1833 }
 0x792   :  { %v1844_v22 = vpop.permute.xlu0 %1843 }
 0x793   :  { %v1916_v18 = vsel %vm217_vm4, %v3957_v49, %v1844_v22  ;;  %v1939_v22 = vld [vmem:[%s4149_s5 + $0x20] sm:$0xf] }
 0x795   :  { %v1842_v16 = vpop.permute.xlu1 %1841 }
 0x796   :  { %v1915_v8 = vsel %vm217_vm4, %v3968_v15, %v1842_v16  ;;  %v1702_v15 = vsel %vm530_vm8, %v3868_v54, %v3980_v9  ;;  %v1909_v54 = vsel %vm217_vm4, %v3829_v2, %v3977_v27  ;;  %v1908_v9 = vsel %vm217_vm4, %v3803_v5, %v4004_v61  ;;  %v1940_v16 = vld [vmem:[%s4149_s5 + $0x28] sm:$0xf] }
 0x797   :  { %v1911_v63 = vsel %vm217_vm4, %v1702_v15, %v1834_v24  ;;  %v1938_v24 = vld [vmem:[%s4149_s5 + $0x18] sm:$0xff] }
 0x798   :  { %v1880_v62 = vpop.permute.xlu0 %1879 }
 0x799   :  { %v1934_v4 = vsel %vm217_vm4, %v3999_v3, %v1880_v62 }
 0x7a3   :  { %v1850_v47 = vpop.permute.xlu0 %1849 }
 0x7a4   :  { %v1856_v31 = vpop.permute.xlu1 %1855  ;;  %v1919_v43 = vsel %vm217_vm4, %v3975_v32, %v1850_v47 }
 0x7a5   :  { %v1922_v39 = vsel %vm217_vm4, %v1655_v29, %v1856_v31 }
 0x7a6   :  { %1975 = vmatpush1.msra.mxu1 %v1922_v39 }
 0x7a7   :  { %1976 = vmatprep.subr.mxu1 %v4284_v35  ;;  %v4050_v60 = vpop.permute.xlu0 %1873 }
 0x7ae   :  { %v1854_v45 = vpop.permute.xlu1 %1853 }
 0x7af   :  { %v1921_v23 = vsel %vm217_vm4, %v1653_v0, %v1854_v45 }
 0x7b0   :  { %1977 = vmatpush1.msra.mxu1 %v1921_v23 }
 0x7b1   :  { %1978 = vmatprep.subr.mxu1 %v4284_v35 }
 0x7b2   :  { %v1692_v44 = vpop.permute.xlu1 %1691  ;;  %1979 = vmatpush1.msra.mxu1 %v1920_v51 }
 0x7b3   :  { %1980 = vmatprep.subr.mxu1 %v4284_v35 }
 0x7b4   :  { %1981 = vmatpush1.msra.mxu1 %v1919_v43 }
 0x7b5   :  { %1982 = vmatprep.subr.mxu1 %v4284_v35 }
 0x7b6   :  { %v1690_v21 = vpop.permute.xlu1 %1689  ;;  %v1848_v58 = vpop.permute.xlu0 %1847 }
 0x7b7   :  { %v1918_v12 = vsel %vm217_vm4, %v1633_v55, %v1848_v58  ;;  %v1931_v3 = vsel %vm217_vm4, %v1690_v21, %v4050_v60 }
 0x7b8   :  { %1983 = vmatpush1.msra.mxu1 %v1918_v12 }
 0x7b9   :  { %1984 = vmatprep.subr.mxu1 %v4284_v35 }
 0x7ba   :  { %v1840_v50 = vpop.permute.xlu1 %1839  ;;  %v1846_v57 = vpop.permute.xlu0 %1845 }
 0x7bb   :  { %v1917_v34 = vsel %vm217_vm4, %v1631_v38, %v1846_v57  ;;  %v1914_v56 = vsel %vm217_vm4, %v1611_v53, %v1840_v50 }
 0x7bc   :  { %1985 = vmatpush1.msra.mxu1 %v1917_v34  ;;  %v2055_v34 = vld [vmem:[%s4151_s7] sm:$0x1] }
 0x7bd   :  { %1986 = vmatprep.subr.mxu1 %v4284_v35 }
 0x7be   :  { %v1838_v25 = vpop.permute.xlu1 %1837  ;;  %1987 = vmatpush1.msra.mxu1 %v1916_v18  ;;  %v1688_v30 = vpop.permute.xlu0 %1687  ;;  %v2062_v18 = vlaneseq }
 0x7bf   :  { %1988 = vmatprep.subr.mxu1 %v4284_v35  ;;  %v1913_v49 = vsel %vm217_vm4, %v1609_v36, %v1838_v25  ;;  %v1937_v36 = vld [vmem:[%s4149_s5 + $0x10] sm:$0xff] }
 0x7c0   :  { %1989 = vmatpush1.msra.mxu1 %v1915_v8  ;;  %v2063_v25 = vshrl.u32 %v2062_v18, 7 }
 0x7c1   :  { %1990 = vmatprep.subr.mxu1 %v4284_v35 }
 0x7c2   :  { %v1681_v32 = vpop.permute.xlu1 %1680  ;;  %1991 = vmatpush1.msra.mxu1 %v1914_v56  ;;  %v1679_v6 = vpop.permute.xlu0 %1678 }
 0x7c3   :  { %1992 = vmatprep.subr.mxu1 %v4284_v35  ;;  %v1706_v13 = vsel %vm90_vm2, %v1681_v32, %v1688_v30  ;;  %v2064_v30 = vsub.s32 0, %v2063_v25 }
 0x7c4   :  { %1993 = vmatpush1.msra.mxu1 %v1913_v49 }
 0x7c5   :  { %1994 = vmatprep.subr.mxu1 %v4284_v35 }
 0x7c6   :  { %v1872_v19 = vpop.permute.xlu1 %1871  ;;  %1995 = vmatpush1.msra.mxu1 %v1912_v10  ;;  %v1677_v37 = vpop.permute.xlu0 %1676 }
 0x7c7   :  { %1996 = vmatprep.subr.mxu1 %v4284_v35  ;;  %v1930_v55 = vsel %vm217_vm4, %v1706_v13, %v1872_v19 }
 0x7c8   :  { %1997 = vmatpush1.msra.mxu1 %v1911_v63 }
 0x7c9   :  { %1998 = vmatprep.subr.mxu1 %v4284_v35 }
 0x7ca   :  { %v1866_v52 = vpop.permute.xlu1 %1865  ;;  %1999 = vmatpush1.msra.mxu1 %v1910_v1  ;;  %v1675_v28 = vpop.permute.xlu0 %1674 }
 0x7cb   :  { %2000 = vmatprep.subr.mxu1 %v4284_v35 }
 0x7cc   :  { %2001 = vmatpush1.msra.mxu1 %v1909_v54 }
 0x7cd   :  { %2002 = vmatprep.subr.mxu1 %v4284_v35 }
 0x7ce   :  { %v1673_v40 = vpop.permute.xlu1 %1672  ;;  %2003 = vmatpush1.msra.mxu1 %v1908_v9  ;;  %v1878_v26 = vpop.permute.xlu0 %1877 }
 0x7cf   :  { %2014 = vmatprep.subr.mxu1 %v4284_v35  ;;  %v1933_v2 = vsel %vm217_vm4, %v4039_v42, %v1878_v26  ;;  %v1927_v42 = vsel %vm217_vm4, %v1675_v28, %v1866_v52 }
 0x7d0   :  { %2168 = vmatpush2.msk.msra.mxu1 %vm461_vm9, %v1934_v4 }
 0x7d1   :  { %2016 = vmatprep.subr.mxu1 %v4284_v35 }
 0x7d2   :  { %v1870_v27 = vpop.permute.xlu1 %1869  ;;  %2017 = vmatpush2.msra.mxu1 %v1933_v2  ;;  %v1876_v5 = vpop.permute.xlu0 %1875 }
 0x7d3   :  { %v1932_v61 = vsel %vm217_vm4, %v1692_v44, %v1876_v5  ;;  %2018 = vmatprep.subr.mxu1 %v4284_v35  ;;  %v1929_v38 = vsel %vm217_vm4, %v1679_v6, %v1870_v27 }
 0x7d4   :  { %2019 = vmatpush2.msra.mxu1 %v1932_v61 }
 0x7d5   :  { %2020 = vmatprep.subr.mxu1 %v4284_v35 }
 0x7d6   :  { %v1868_v17 = vpop.permute.xlu1 %1867  ;;  %2021 = vmatpush2.msra.mxu1 %v1931_v3  ;;  %v1667_v48 = vpop.permute.xlu0 %1666 }
 0x7d7   :  { %2022 = vmatprep.subr.mxu1 %v4284_v35  ;;  %v1928_v14 = vsel %vm217_vm4, %v1677_v37, %v1868_v17  ;;  %v1705_v46 = vsel %vm530_vm8, %v1667_v48, %v1673_v40 }
 0x7d8   :  { %2023 = vmatpush2.msra.mxu1 %v1930_v55 }
 0x7d9   :  { %2024 = vmatprep.subr.mxu1 %v4284_v35 }
 0x7da   :  { %2025 = vmatpush2.msra.mxu1 %v1929_v38  ;;  %v1864_v7 = vpop.permute.xlu0 %1863  ;;  %v1665_v11 = vpop.permute.xlu1 %1664 }
 0x7db   :  { %2026 = vmatprep.subr.mxu1 %v4284_v35  ;;  %v1926_v33 = vsel %vm217_vm4, %v1705_v46, %v1864_v7 }
 0x7dc   :  { %2027 = vmatpush2.msra.mxu1 %v1928_v14 }
 0x7dd   :  { %2028 = vmatprep.subr.mxu1 %v4284_v35 }
 0x7de   :  { %2029 = vmatpush2.msra.mxu1 %v1927_v42  ;;  %v1862_v20 = vpop.permute.xlu0 %1861  ;;  %v1663_v41 = vpop.permute.xlu1 %1662 }
 0x7df   :  { %2030 = vmatprep.subr.mxu1 %v4284_v35  ;;  %v1925_v29 = vsel %vm217_vm4, %v1665_v11, %v1862_v20 }
 0x7e0   :  { %2031 = vmatpush2.msra.mxu1 %v1926_v33 }
 0x7e1   :  { %2032 = vmatprep.subr.mxu1 %v4284_v35 }
 0x7e2   :  { %2033 = vmatpush2.msra.mxu1 %v1925_v29  ;;  %v1860_v0 = vpop.permute.xlu0 %1859 }
 0x7e3   :  { %v1924_v53 = vsel %vm217_vm4, %v1663_v41, %v1860_v0  ;;  %2034 = vmatprep.subr.mxu1 %v4284_v35 }
 0x7e4   :  { %2035 = vmatpush2.msra.mxu1 %v1924_v53 }
 0x7e5   :  { %2037 = vmatmul.mubr.f32.vlgmr.msra.gmra.mxu1 %v1935_v59 }
 0x7e6   :  { %2170 = vmatprep.mubr.msk.f32.mxu1 %vm1959_vm13, %v1938_v24 }
 0x7e9   :  { %2042 = vmatmul.mubr.f32.gmra.mxu1 %v1937_v36 }
 0x7ea   :  { %2171 = vmatprep.mubr.msk.f32.mxu1 %vm1959_vm13, %v1940_v16 }
 0x7eb   :  { %v1957_v62 = vpop.permute.xlu1 %1956 }
 0x7ed   :  { %2047 = vmatmul.mubr.f32.gmra.mxu1 %v1939_v22 }
 0x7ef   :  { %v1952_v23 = vpop.permute.xlu0 %1951  ;;  %v1947_v43 = vpop.permute.xlu1 %1946 }
 0x7f3   :  { %v2060_v8 = vpop.permute.xlu0 %2059 }
 0x7f4   :  { %v2065_v56 = vrot.slane %v2060_v8, %v2064_v30 }
 0x8a5   :  { %v2038_v31 = vpop.f32.mrf.mxu1 }
 0x8a6   :  { %v2039_v58 = vadd.f32 %v2038_v31, %v1947_v43 }
 0x8a7   :  { %v2040_v39 = vpop.f32.mrf.mxu1 }
 0x8a8   :  { %v2052_v57 = vmax.f32 %v2039_v58, 0.0 }
 0x8a9   :  { %v2043_v47 = vpop.f32.mrf.mxu1 }
 0x8aa   :  { %v2044_v60 = vadd.f32 %v2043_v47, %v1952_v23 }
 0x8ab   :  { %v2045_v45 = vpop.f32.mrf.mxu1 }
 0x8ac   :  { %v2053_v50 = vmax.f32 %v2044_v60, 0.0 }
 0x8ad   :  { %v2048_v51 = vpop.f32.mrf.mxu1 }
 0x8ae   :  { %v2049_v44 = vadd.f32 %v2048_v51, %v1957_v62 }
 0x8af   :  { %v2050_v21 = vpop.f32.mrf.mxu1 }
 0x8b0   :  { %v2054_v12 = vmax.f32 %v2049_v44, 0.0 }
 0x8b2   :  { %2354 = vmatpush3.msk.msra.mxu0 %vm90_vm2, %v2054_v12 }
 0x8b3   :  { %2355 = vmatprep.subr.mxu0 %v4284_v35 }
 0x8b4   :  { %2356 = vmatpush3.msra.mxu0 %v2053_v50 }
 0x8b5   :  { %2357 = vmatprep.subr.mxu0 %v4284_v35 }
 0x8b6   :  { %2358 = vmatpush3.msra.mxu0 %v2052_v57 }
 0x8b7   :  { %2360 = vmatmul.mubr.msk.f32.vlgmr.msra.gmra.mxu0 %vm2066_vm14, %v2055_v34 }
 0x977   :  { %v2139_v32 = vpop.f32.mrf.mxu0 }
 0x978   :  { %v2140_v6 = vadd.f32 %v2139_v32, %v2065_v56 }
 0x979   :  { %v2361_v49 = vpop.f32.mrf.mxu0 }
 0x97a   :  { %v2174_v10 = vmul.f32 -1.442695, %v2140_v6 }
 0x97c   :  { %2387 = vpow2.f32 %v2174_v10 }
 0x989   :  { %v2388_v15 = vpop.eup %2387 }
 0x98a   :  { %v2146_v19 = vadd.f32 1.0, %v2388_v15 }
 0x98c   :  { %2389 = vrcp.f32 %v2146_v19 }
 0x999   :  { %v2390_v37 = vpop.eup %2389 }
 0x99a   :  { %2150 = vst.msk [vmem:[%s4152_s9] sm:$0x1] %vm2149_vm15, %v2390_v37 }

</bundles_post_ra>
